<compile_context>
chip_gen: v7x
topology: tpu7x:2x2x1
jax: 0.10.0
libtpu: 0.0.40
codegen_flags: <defaults>
</compile_context>

<pallas_src>
import jax
import jax.numpy as jnp
import numpy as np
from jax import lax
from jax.experimental import pallas as pl
from jax.experimental.pallas import tpu as pltpu


# ----------------------------- kernel helpers -----------------------------

def _layer_norm(x, g, b, eps=1e-5):
    mu = jnp.mean(x, axis=-1, keepdims=True)
    var = jnp.mean((x - mu) ** 2, axis=-1, keepdims=True)
    return (x - mu) * lax.rsqrt(var + eps) * g + b


# ----------------------- fused whole-model kernel --------------------------

def fused_model_kernel(x_ref, wqkv_ref, wz_ref, wzb_ref,
                       g1_ref, be1_ref, w1_ref, b1_ref, w2_ref, b2_ref,
                       g2_ref, be2_ref, qv_ref, wy_ref, wyb_ref,
                       logp_ref, fattn_ref, attn_ref):
    x = x_ref[0]                                    # (L, E)
    L, E = x.shape
    U = wqkv_ref.shape[0]
    HE = wz_ref.shape[1]                            # H * E
    H = HE // E
    inv_sqrt_e = float(1.0 / np.sqrt(E))            # single post-dot score scale

    attn_acc = jnp.zeros((L, L), jnp.float32)
    for u in range(U):                              # units: static unrolled loop
        # ---- multi-head self attention -----------------------------------
        # fused Q/K/V projection: one lane-dense (L,E)x(E,3*H*E) matmul
        qkv = jnp.dot(x, wqkv_ref[u], preferred_element_type=jnp.float32)
        q = qkv[:, 0 * HE:1 * HE]                   # (L, H*E)
        k = qkv[:, 1 * HE:2 * HE]
        v = qkv[:, 2 * HE:3 * HE]

        # per-head scores, stacked along sublanes -> one (H*L, L) softmax
        s_list = []
        for h in range(H):
            qh = q[:, h * E:(h + 1) * E]
            kh = k[:, h * E:(h + 1) * E]
            s_list.append(lax.dot_general(qh, kh, (((1,), (1,)), ((), ())),
                                          preferred_element_type=jnp.float32))
        s_all = jnp.concatenate(s_list, axis=0) * inv_sqrt_e       # (H*L, L)
        s_all = s_all - jnp.max(s_all, axis=-1, keepdims=True)
        p_all = jnp.exp(s_all)
        p_all = p_all * pl.reciprocal(jnp.sum(p_all, axis=-1, keepdims=True),
                                      approx=True)

        # per-head attention outputs, lane-concatenated -> (L, H*E)
        z_list = []
        for h in range(H):
            ph = p_all[h * L:(h + 1) * L]                          # (L, L)
            attn_acc = attn_acc + ph
            z_list.append(jnp.dot(ph, v[:, h * E:(h + 1) * E],
                                  preferred_element_type=jnp.float32))
        z_cat = jnp.concatenate(z_list, axis=-1)                   # (L, H*E)

        # fused output projection Wz: one (L,H*E)x(H*E,E) matmul
        z = (jnp.dot(z_cat, wz_ref[u], preferred_element_type=jnp.float32)
             + wzb_ref[u])

        # ---- residual + LN1 + MLP + residual + LN2 ------------------------
        h1 = _layer_norm(z + x, g1_ref[u], be1_ref[u])
        ff = jnp.dot(h1, w1_ref[u], preferred_element_type=jnp.float32) + b1_ref[u]
        ff = jnp.maximum(ff, 0.0)                                  # ReLU
        ff = jnp.dot(ff, w2_ref[u], preferred_element_type=jnp.float32) + b2_ref[u]
        x = _layer_norm(ff + h1, g2_ref[u], be2_ref[u])

    # averaged multi-head attention map, written once
    attn_ref[0] = attn_acc * (1.0 / (H * U))

    # ---- FeatureEmbAttention pooling + Wy + log_softmax -------------------
    aw = lax.dot_general(qv_ref[...], x, (((1,), (1,)), ((), ())),
                         preferred_element_type=jnp.float32) * inv_sqrt_e  # (1, L)
    aw = aw - jnp.max(aw, axis=-1, keepdims=True)
    p = jnp.exp(aw)
    p = p * pl.reciprocal(jnp.sum(p, axis=-1, keepdims=True), approx=True)
    fattn_ref[0] = p
    zp = jnp.dot(p, x, preferred_element_type=jnp.float32)                 # (1, E)
    y = jnp.dot(zp, wy_ref[...], preferred_element_type=jnp.float32) + wyb_ref[...]
    m = jnp.max(y, axis=-1, keepdims=True)
    lse = m + jnp.log(jnp.sum(jnp.exp(y - m), axis=-1, keepdims=True))
    logp_ref[0] = y - lse                                                  # log_softmax


# ------------------------------ wrapper -------------------------------------

def _full_spec(shape):
    # whole-array block, constant index across the batch grid
    return pl.BlockSpec(shape, lambda b, _n=len(shape): (0,) * _n)


@jax.jit
def categ_criscas_forward(tokens, params):
    # nucleotide + positional embedding (gather = glue, plain JAX)
    x = params["nucleo_emb"][tokens] + params["pos_emb"][None, :, :]
    B, L, E = x.shape
    f = params["fused"]
    C = params["wyt"].shape[1]

    grid_spec = pltpu.PrefetchScalarGridSpec(
        num_scalar_prefetch=0,
        grid=(B,),
        in_specs=[
            pl.BlockSpec((1, L, E), lambda b: (b, 0, 0)),
            _full_spec(f["wqkv"].shape), _full_spec(f["wz"].shape),
            _full_spec(f["wzb"].shape),
            _full_spec(f["g1"].shape), _full_spec(f["be1"].shape),
            _full_spec(f["w1t"].shape), _full_spec(f["b1"].shape),
            _full_spec(f["w2t"].shape), _full_spec(f["b2"].shape),
            _full_spec(f["g2"].shape), _full_spec(f["be2"].shape),
            _full_spec(params["queryv"].shape),
            _full_spec(params["wyt"].shape),
            _full_spec(params["wyb"].shape),
        ],
        out_specs=[
            pl.BlockSpec((1, 1, C), lambda b: (b, 0, 0)),
            pl.BlockSpec((1, 1, L), lambda b: (b, 0, 0)),
            pl.BlockSpec((1, L, L), lambda b: (b, 0, 0)),
        ],
    )
    logp, fattn, attn_avg = pl.pallas_call(
        fused_model_kernel,
        out_shape=(jax.ShapeDtypeStruct((B, 1, C), jnp.float32),
                   jax.ShapeDtypeStruct((B, 1, L), jnp.float32),
                   jax.ShapeDtypeStruct((B, L, L), jnp.float32)),
        grid_spec=grid_spec,
        compiler_params=pltpu.CompilerParams(
            dimension_semantics=("parallel",)),
    )(x, f["wqkv"], f["wz"], f["wzb"], f["g1"], f["be1"],
      f["w1t"], f["b1"], f["w2t"], f["b2"], f["g2"], f["be2"],
      params["queryv"], params["wyt"], params["wyb"])
    return logp[:, 0, :], fattn[:, 0, :], attn_avg


# ------------------------- pure-JAX reference check ------------------------

def reference_forward(tokens, params):
    x = params["nucleo_emb"][tokens] + params["pos_emb"][None, :, :]
    B, L, E = x.shape
    attn_sum = jnp.zeros((B, L, L), jnp.float32)
    for p in params["units"]:
        H = p["wq"].shape[0]
        scale = E ** -0.25
        heads, attn_acc = [], jnp.zeros((B, L, L), jnp.float32)
        for h in range(H):
            q = x @ p["wq"][h]
            k = x @ p["wk"][h]
            v = x @ p["wv"][h]
            s = jnp.einsum("bld,bmd->blm", q * scale, k * scale)
            a = jax.nn.softmax(s, axis=-1)
            attn_acc = attn_acc + a
            heads.append(jnp.einsum("blm,bmd->bld", a, v))
        cat = jnp.concatenate(heads, axis=-1)               # (B, L, H*E)
        z = cat @ p["wz"].reshape(H * E, E) + p["wzb"][0]   # Wz on concat
        attn_sum = attn_sum + attn_acc / H
        h1 = _layer_norm(z + x, p["g1"][0], p["be1"][0])
        ff = jnp.maximum(h1 @ p["w1t"] + p["b1"][0], 0.0) @ p["w2t"] + p["b2"][0]
        x = _layer_norm(ff + h1, p["g2"][0], p["be2"][0])
    attn_avg = attn_sum / len(params["units"])
    scale = E ** -0.25
    aw = jax.nn.softmax((x * scale) @ (params["queryv"][0] * scale), axis=1)  # (B, L)
    z = jnp.einsum("bl,bld->bd", aw, x)
    y = z @ params["wyt"] + params["wyb"][0]
    return jax.nn.log_softmax(y, axis=-1), aw, attn_avg


# ------------------------------- params ------------------------------------

def build_fused(units):
    """Stack per-unit weights into lane-dense fused tensors for the kernel."""
    def cat_heads(w):                          # (H, E, E) -> (E, H*E)
        return jnp.concatenate(list(w), axis=1)

    wqkv = jnp.stack([
        jnp.concatenate([cat_heads(u["wq"]), cat_heads(u["wk"]),
                         cat_heads(u["wv"])], axis=1)
        for u in units], axis=0)                               # (U, E, 3*H*E)
    wz = jnp.stack([u["wz"].reshape(-1, u["wz"].shape[-1]) for u in units],
                   axis=0)                                     # (U, H*E, E)

    def stack(name):
        return jnp.stack([u[name] for u in units], axis=0)

    return {"wqkv": wqkv, "wz": wz, "wzb": stack("wzb"),
            "g1": stack("g1"), "be1": stack("be1"),
            "w1t": stack("w1t"), "b1": stack("b1"),
            "w2t": stack("w2t"), "b2": stack("b2"),
            "g2": stack("g2"), "be2": stack("be2")}


def make_params(key, *, num_nuc, L, E, H, U, C, F):
    keys = iter(jax.random.split(key, 128))

    def mat(shape, fan_in):
        return (jax.random.normal(next(keys), shape, jnp.float32)
                * (1.0 / np.sqrt(fan_in)))

    def unif(shape):
        return jax.random.uniform(next(keys), shape, jnp.float32, -1.0, 1.0)

    params = {
        "nucleo_emb": mat((num_nuc, E), E),
        "pos_emb": mat((L, E), E),
        "units": [],
        "queryv": jax.random.normal(next(keys), (1, E), jnp.float32),
        "wyt": mat((E, C), E),
        "wyb": unif((1, C)),
    }
    for _ in range(U):
        params["units"].append({
            "wq": mat((H, E, E), E),      # stacked, pre-transposed: q = x @ wq[h]
            "wk": mat((H, E, E), E),
            "wv": mat((H, E, E), E),
            "wz": mat((H, E, E), H * E),  # Wz weight sliced per head (transposed)
            "wzb": unif((1, E)),
            "g1": jnp.ones((1, E), jnp.float32),
            "be1": unif((1, E)),
            "w1t": mat((E, F), E),
            "b1": unif((1, F)),
            "w2t": mat((F, E), F),
            "b2": unif((1, E)),
            "g2": jnp.ones((1, E), jnp.float32),
            "be2": unif((1, E)),
        })
    params["fused"] = build_fused(params["units"])
    return params


# --------------------------------- main -------------------------------------

if __name__ == "__main__":
    B, L, E = 2, 8, 32          # batch, seq_length, embed_dim (input_size)
    H, U, C = 4, 2, 2           # attn heads, transformer units, classes
    NUM_NUC = 4
    F = 2 * E                   # mlp_embed_factor = 2

    key = jax.random.PRNGKey(0)
    k_tok, k_par = jax.random.split(key)
    tokens = jax.random.randint(k_tok, (B, L), 0, NUM_NUC, dtype=jnp.int32)
    params = make_params(k_par, num_nuc=NUM_NUC, L=L, E=E, H=H, U=U, C=C, F=F)

    logp, fattn, attn_avg = categ_criscas_forward(tokens, params)
    jax.block_until_ready((logp, fattn, attn_avg))

    # correctness check against a pure-JAX reference of the PyTorch semantics.
    # Tolerances allow for the approx-reciprocal softmax normalization and the
    # post-dot score scaling (exact division / per-q,k scaling matches at 1e-4).
    r_logp, r_fattn, r_attn = reference_forward(tokens, params)
    assert np.allclose(np.asarray(fattn), np.asarray(r_fattn), atol=2e-3), "fattn mismatch"
    assert np.allclose(np.asarray(attn_avg), np.asarray(r_attn), atol=2e-3), "attn mismatch"
    assert np.allclose(np.asarray(logp), np.asarray(r_logp), atol=1e-2), "logp mismatch"

    assert logp.shape == (B, C) and fattn.shape == (B, L) and attn_avg.shape == (B, L, L)
    print("KERNEL_OK")
</pallas_src>

<mosaic_0001>
module attributes {stable_mosaic.version = 11 : i64} {
  func.func @fused_model_kernel(%arg0: i32, %arg1: memref<1x8x32xf32, #tpu.memory_space<vmem>>, %arg2: memref<2x32x384xf32, #tpu.memory_space<vmem>>, %arg3: memref<2x128x32xf32, #tpu.memory_space<vmem>>, %arg4: memref<2x1x32xf32, #tpu.memory_space<vmem>>, %arg5: memref<2x1x32xf32, #tpu.memory_space<vmem>>, %arg6: memref<2x1x32xf32, #tpu.memory_space<vmem>>, %arg7: memref<2x32x64xf32, #tpu.memory_space<vmem>>, %arg8: memref<2x1x64xf32, #tpu.memory_space<vmem>>, %arg9: memref<2x64x32xf32, #tpu.memory_space<vmem>>, %arg10: memref<2x1x32xf32, #tpu.memory_space<vmem>>, %arg11: memref<2x1x32xf32, #tpu.memory_space<vmem>>, %arg12: memref<2x1x32xf32, #tpu.memory_space<vmem>>, %arg13: memref<1x32xf32, #tpu.memory_space<vmem>>, %arg14: memref<32x2xf32, #tpu.memory_space<vmem>>, %arg15: memref<1x2xf32, #tpu.memory_space<vmem>>, %arg16: memref<1x1x2xf32, #tpu.memory_space<vmem>>, %arg17: memref<1x1x8xf32, #tpu.memory_space<vmem>>, %arg18: memref<1x8x8xf32, #tpu.memory_space<vmem>>) attributes {dimension_semantics = [#tpu.dimension_semantics<parallel>], iteration_bounds = array<i64: 2>, scalar_prefetch = 0 : i64, scratch_operands = 0 : i64, tpu.core_type = #tpu.core_type<tc>, window_params = [{transform_indices = @transform_0, window_bounds = array<i64: 1, 8, 32>}, {pipeline_mode = #tpu.pipeline_mode<synchronous>, transform_indices = @transform_1, window_bounds = array<i64: 2, 32, 384>}, {pipeline_mode = #tpu.pipeline_mode<synchronous>, transform_indices = @transform_2, window_bounds = array<i64: 2, 128, 32>}, {pipeline_mode = #tpu.pipeline_mode<synchronous>, transform_indices = @transform_3, window_bounds = array<i64: 2, 1, 32>}, {pipeline_mode = #tpu.pipeline_mode<synchronous>, transform_indices = @transform_4, window_bounds = array<i64: 2, 1, 32>}, {pipeline_mode = #tpu.pipeline_mode<synchronous>, transform_indices = @transform_5, window_bounds = array<i64: 2, 1, 32>}, {pipeline_mode = #tpu.pipeline_mode<synchronous>, transform_indices = @transform_6, window_bounds = array<i64: 2, 32, 64>}, {pipeline_mode = #tpu.pipeline_mode<synchronous>, transform_indices = @transform_7, window_bounds = array<i64: 2, 1, 64>}, {pipeline_mode = #tpu.pipeline_mode<synchronous>, transform_indices = @transform_8, window_bounds = array<i64: 2, 64, 32>}, {pipeline_mode = #tpu.pipeline_mode<synchronous>, transform_indices = @transform_9, window_bounds = array<i64: 2, 1, 32>}, {pipeline_mode = #tpu.pipeline_mode<synchronous>, transform_indices = @transform_10, window_bounds = array<i64: 2, 1, 32>}, {pipeline_mode = #tpu.pipeline_mode<synchronous>, transform_indices = @transform_11, window_bounds = array<i64: 2, 1, 32>}, {pipeline_mode = #tpu.pipeline_mode<synchronous>, transform_indices = @transform_12, window_bounds = array<i64: 1, 32>}, {pipeline_mode = #tpu.pipeline_mode<synchronous>, transform_indices = @transform_13, window_bounds = array<i64: 32, 2>}, {pipeline_mode = #tpu.pipeline_mode<synchronous>, transform_indices = @transform_14, window_bounds = array<i64: 1, 2>}, {transform_indices = @transform_15, window_bounds = array<i64: 1, 1, 2>}, {transform_indices = @transform_16, window_bounds = array<i64: 1, 1, 8>}, {transform_indices = @transform_17, window_bounds = array<i64: 1, 8, 8>}]} {
    %c0 = arith.constant 0 : index
    %c0_0 = arith.constant 0 : index
    %c0_1 = arith.constant 0 : index
    %0 = vector.load %arg1[%c0, %c0_0, %c0_1] : memref<1x8x32xf32, #tpu.memory_space<vmem>>, vector<1x8x32xf32>
    %1 = vector.shape_cast %0 : vector<1x8x32xf32> to vector<8x32xf32>
    %cst = arith.constant 0.000000e+00 : f32
    %2 = vector.broadcast %cst : f32 to vector<8x8xf32>
    %c0_2 = arith.constant 0 : index
    %c0_3 = arith.constant 0 : index
    %c0_4 = arith.constant 0 : index
    %3 = vector.load %arg2[%c0_2, %c0_3, %c0_4] : memref<2x32x384xf32, #tpu.memory_space<vmem>>, vector<1x32x384xf32>
    %4 = vector.shape_cast %3 : vector<1x32x384xf32> to vector<32x384xf32>
    %cst_5 = arith.constant dense<0.000000e+00> : vector<8x384xf32>
    %5 = tpu.matmul %1, %4, %cst_5 {dimension_numbers = #tpu.dot_dimension_numbers<[1], [0], [0], [1], [0, 0, 1, 1], [], []>} : vector<8x32xf32>, vector<32x384xf32>, vector<8x384xf32> -> vector<8x384xf32>
    %6 = vector.extract_strided_slice %5 {offsets = [0, 0], sizes = [8, 128], strides = [1, 1]} : vector<8x384xf32> to vector<8x128xf32>
    %7 = vector.extract_strided_slice %5 {offsets = [0, 128], sizes = [8, 128], strides = [1, 1]} : vector<8x384xf32> to vector<8x128xf32>
    %8 = vector.extract_strided_slice %5 {offsets = [0, 256], sizes = [8, 128], strides = [1, 1]} : vector<8x384xf32> to vector<8x128xf32>
    %9 = vector.extract_strided_slice %6 {offsets = [0, 0], sizes = [8, 32], strides = [1, 1]} : vector<8x128xf32> to vector<8x32xf32>
    %10 = vector.extract_strided_slice %7 {offsets = [0, 0], sizes = [8, 32], strides = [1, 1]} : vector<8x128xf32> to vector<8x32xf32>
    %cst_6 = arith.constant dense<0.000000e+00> : vector<8x8xf32>
    %11 = tpu.matmul %9, %10, %cst_6 {dimension_numbers = #tpu.dot_dimension_numbers<[1], [1], [0], [0], [0, 0, 1, 0], [], []>} : vector<8x32xf32>, vector<8x32xf32>, vector<8x8xf32> -> vector<8x8xf32>
    %12 = vector.extract_strided_slice %6 {offsets = [0, 32], sizes = [8, 32], strides = [1, 1]} : vector<8x128xf32> to vector<8x32xf32>
    %13 = vector.extract_strided_slice %7 {offsets = [0, 32], sizes = [8, 32], strides = [1, 1]} : vector<8x128xf32> to vector<8x32xf32>
    %cst_7 = arith.constant dense<0.000000e+00> : vector<8x8xf32>
    %14 = tpu.matmul %12, %13, %cst_7 {dimension_numbers = #tpu.dot_dimension_numbers<[1], [1], [0], [0], [0, 0, 1, 0], [], []>} : vector<8x32xf32>, vector<8x32xf32>, vector<8x8xf32> -> vector<8x8xf32>
    %15 = vector.extract_strided_slice %6 {offsets = [0, 64], sizes = [8, 32], strides = [1, 1]} : vector<8x128xf32> to vector<8x32xf32>
    %16 = vector.extract_strided_slice %7 {offsets = [0, 64], sizes = [8, 32], strides = [1, 1]} : vector<8x128xf32> to vector<8x32xf32>
    %cst_8 = arith.constant dense<0.000000e+00> : vector<8x8xf32>
    %17 = tpu.matmul %15, %16, %cst_8 {dimension_numbers = #tpu.dot_dimension_numbers<[1], [1], [0], [0], [0, 0, 1, 0], [], []>} : vector<8x32xf32>, vector<8x32xf32>, vector<8x8xf32> -> vector<8x8xf32>
    %18 = vector.extract_strided_slice %6 {offsets = [0, 96], sizes = [8, 32], strides = [1, 1]} : vector<8x128xf32> to vector<8x32xf32>
    %19 = vector.extract_strided_slice %7 {offsets = [0, 96], sizes = [8, 32], strides = [1, 1]} : vector<8x128xf32> to vector<8x32xf32>
    %cst_9 = arith.constant dense<0.000000e+00> : vector<8x8xf32>
    %20 = tpu.matmul %18, %19, %cst_9 {dimension_numbers = #tpu.dot_dimension_numbers<[1], [1], [0], [0], [0, 0, 1, 0], [], []>} : vector<8x32xf32>, vector<8x32xf32>, vector<8x8xf32> -> vector<8x8xf32>
    %21 = tpu.concatenate %11, %14, %17, %20 in 0 : vector<8x8xf32>, vector<8x8xf32>, vector<8x8xf32>, vector<8x8xf32> -> vector<32x8xf32>
    %cst_10 = arith.constant 0.176776692 : f32
    %22 = vector.broadcast %cst_10 : f32 to vector<32x8xf32>
    %23 = arith.mulf %21, %22 : vector<32x8xf32>
    %cst_11 = arith.constant dense<0xFF800000> : vector<32xf32>
    %24 = vector.multi_reduction <maximumf>, %23, %cst_11 [1] : vector<32x8xf32> to vector<32xf32>
    %25 = vector.shape_cast %24 : vector<32xf32> to vector<32x1xf32>
    %26 = vector.broadcast %25 : vector<32x1xf32> to vector<32x8xf32>
    %27 = arith.subf %23, %26 : vector<32x8xf32>
    %28 = math.exp %27 : vector<32x8xf32>
    %cst_12 = arith.constant dense<0.000000e+00> : vector<32xf32>
    %29 = vector.multi_reduction <add>, %28, %cst_12 [1] : vector<32x8xf32> to vector<32xf32>
    %30 = vector.shape_cast %29 : vector<32xf32> to vector<32x1xf32>
    %31 = tpu.reciprocal %30 {approx = true} : vector<32x1xf32> -> vector<32x1xf32>
    %32 = vector.broadcast %31 : vector<32x1xf32> to vector<32x8xf32>
    %33 = arith.mulf %28, %32 : vector<32x8xf32>
    %34 = vector.extract_strided_slice %33 {offsets = [0, 0], sizes = [8, 8], strides = [1, 1]} : vector<32x8xf32> to vector<8x8xf32>
    %35 = arith.addf %2, %34 : vector<8x8xf32>
    %36 = vector.extract_strided_slice %8 {offsets = [0, 0], sizes = [8, 32], strides = [1, 1]} : vector<8x128xf32> to vector<8x32xf32>
    %cst_13 = arith.constant dense<0.000000e+00> : vector<8x32xf32>
    %37 = tpu.matmul %34, %36, %cst_13 {dimension_numbers = #tpu.dot_dimension_numbers<[1], [0], [0], [1], [0, 0, 1, 1], [], []>} : vector<8x8xf32>, vector<8x32xf32>, vector<8x32xf32> -> vector<8x32xf32>
    %38 = vector.extract_strided_slice %33 {offsets = [8, 0], sizes = [8, 8], strides = [1, 1]} : vector<32x8xf32> to vector<8x8xf32>
    %39 = arith.addf %35, %38 : vector<8x8xf32>
    %40 = vector.extract_strided_slice %8 {offsets = [0, 32], sizes = [8, 32], strides = [1, 1]} : vector<8x128xf32> to vector<8x32xf32>
    %cst_14 = arith.constant dense<0.000000e+00> : vector<8x32xf32>
    %41 = tpu.matmul %38, %40, %cst_14 {dimension_numbers = #tpu.dot_dimension_numbers<[1], [0], [0], [1], [0, 0, 1, 1], [], []>} : vector<8x8xf32>, vector<8x32xf32>, vector<8x32xf32> -> vector<8x32xf32>
    %42 = vector.extract_strided_slice %33 {offsets = [16, 0], sizes = [8, 8], strides = [1, 1]} : vector<32x8xf32> to vector<8x8xf32>
    %43 = arith.addf %39, %42 : vector<8x8xf32>
    %44 = vector.extract_strided_slice %8 {offsets = [0, 64], sizes = [8, 32], strides = [1, 1]} : vector<8x128xf32> to vector<8x32xf32>
    %cst_15 = arith.constant dense<0.000000e+00> : vector<8x32xf32>
    %45 = tpu.matmul %42, %44, %cst_15 {dimension_numbers = #tpu.dot_dimension_numbers<[1], [0], [0], [1], [0, 0, 1, 1], [], []>} : vector<8x8xf32>, vector<8x32xf32>, vector<8x32xf32> -> vector<8x32xf32>
    %46 = vector.extract_strided_slice %33 {offsets = [24, 0], sizes = [8, 8], strides = [1, 1]} : vector<32x8xf32> to vector<8x8xf32>
    %47 = arith.addf %43, %46 : vector<8x8xf32>
    %48 = vector.extract_strided_slice %8 {offsets = [0, 96], sizes = [8, 32], strides = [1, 1]} : vector<8x128xf32> to vector<8x32xf32>
    %cst_16 = arith.constant dense<0.000000e+00> : vector<8x32xf32>
    %49 = tpu.matmul %46, %48, %cst_16 {dimension_numbers = #tpu.dot_dimension_numbers<[1], [0], [0], [1], [0, 0, 1, 1], [], []>} : vector<8x8xf32>, vector<8x32xf32>, vector<8x32xf32> -> vector<8x32xf32>
    %50 = tpu.concatenate %37, %41, %45, %49 in 1 : vector<8x32xf32>, vector<8x32xf32>, vector<8x32xf32>, vector<8x32xf32> -> vector<8x128xf32>
    %c0_17 = arith.constant 0 : index
    %c0_18 = arith.constant 0 : index
    %c0_19 = arith.constant 0 : index
    %51 = vector.load %arg3[%c0_17, %c0_18, %c0_19] : memref<2x128x32xf32, #tpu.memory_space<vmem>>, vector<1x128x32xf32>
    %52 = vector.shape_cast %51 : vector<1x128x32xf32> to vector<128x32xf32>
    %cst_20 = arith.constant dense<0.000000e+00> : vector<8x32xf32>
    %53 = tpu.matmul %50, %52, %cst_20 {dimension_numbers = #tpu.dot_dimension_numbers<[1], [0], [0], [1], [0, 0, 1, 1], [], []>} : vector<8x128xf32>, vector<128x32xf32>, vector<8x32xf32> -> vector<8x32xf32>
    %c0_21 = arith.constant 0 : index
    %c0_22 = arith.constant 0 : index
    %c0_23 = arith.constant 0 : index
    %54 = vector.load %arg4[%c0_21, %c0_22, %c0_23] : memref<2x1x32xf32, #tpu.memory_space<vmem>>, vector<1x1x32xf32>
    %55 = vector.shape_cast %54 : vector<1x1x32xf32> to vector<1x32xf32>
    %56 = vector.broadcast %55 : vector<1x32xf32> to vector<8x32xf32>
    %57 = arith.addf %53, %56 : vector<8x32xf32>
    %58 = arith.addf %57, %1 : vector<8x32xf32>
    %c0_24 = arith.constant 0 : index
    %c0_25 = arith.constant 0 : index
    %c0_26 = arith.constant 0 : index
    %59 = vector.load %arg5[%c0_24, %c0_25, %c0_26] : memref<2x1x32xf32, #tpu.memory_space<vmem>>, vector<1x1x32xf32>
    %60 = vector.shape_cast %59 : vector<1x1x32xf32> to vector<1x32xf32>
    %c0_27 = arith.constant 0 : index
    %c0_28 = arith.constant 0 : index
    %c0_29 = arith.constant 0 : index
    %61 = vector.load %arg6[%c0_27, %c0_28, %c0_29] : memref<2x1x32xf32, #tpu.memory_space<vmem>>, vector<1x1x32xf32>
    %62 = vector.shape_cast %61 : vector<1x1x32xf32> to vector<1x32xf32>
    %cst_30 = arith.constant dense<0.000000e+00> : vector<8xf32>
    %63 = vector.multi_reduction <add>, %58, %cst_30 [1] : vector<8x32xf32> to vector<8xf32>
    %64 = vector.shape_cast %63 : vector<8xf32> to vector<8x1xf32>
    %cst_31 = arith.constant 3.200000e+01 : f32
    %65 = vector.broadcast %cst_31 : f32 to vector<8x1xf32>
    %66 = arith.divf %64, %65 : vector<8x1xf32>
    %67 = vector.broadcast %66 : vector<8x1xf32> to vector<8x32xf32>
    %68 = arith.subf %58, %67 : vector<8x32xf32>
    %69 = arith.mulf %68, %68 : vector<8x32xf32>
    %cst_32 = arith.constant dense<0.000000e+00> : vector<8xf32>
    %70 = vector.multi_reduction <add>, %69, %cst_32 [1] : vector<8x32xf32> to vector<8xf32>
    %71 = vector.shape_cast %70 : vector<8xf32> to vector<8x1xf32>
    %cst_33 = arith.constant 3.200000e+01 : f32
    %72 = vector.broadcast %cst_33 : f32 to vector<8x1xf32>
    %73 = arith.divf %71, %72 : vector<8x1xf32>
    %74 = vector.broadcast %66 : vector<8x1xf32> to vector<8x32xf32>
    %75 = arith.subf %58, %74 : vector<8x32xf32>
    %cst_34 = arith.constant 9.99999974E-6 : f32
    %76 = vector.broadcast %cst_34 : f32 to vector<8x1xf32>
    %77 = arith.addf %73, %76 : vector<8x1xf32>
    %78 = math.rsqrt %77 : vector<8x1xf32>
    %79 = vector.broadcast %78 : vector<8x1xf32> to vector<8x32xf32>
    %80 = arith.mulf %75, %79 : vector<8x32xf32>
    %81 = vector.broadcast %60 : vector<1x32xf32> to vector<8x32xf32>
    %82 = arith.mulf %80, %81 : vector<8x32xf32>
    %83 = vector.broadcast %62 : vector<1x32xf32> to vector<8x32xf32>
    %84 = arith.addf %82, %83 : vector<8x32xf32>
    %c0_35 = arith.constant 0 : index
    %c0_36 = arith.constant 0 : index
    %c0_37 = arith.constant 0 : index
    %85 = vector.load %arg7[%c0_35, %c0_36, %c0_37] : memref<2x32x64xf32, #tpu.memory_space<vmem>>, vector<1x32x64xf32>
    %86 = vector.shape_cast %85 : vector<1x32x64xf32> to vector<32x64xf32>
    %cst_38 = arith.constant dense<0.000000e+00> : vector<8x64xf32>
    %87 = tpu.matmul %84, %86, %cst_38 {dimension_numbers = #tpu.dot_dimension_numbers<[1], [0], [0], [1], [0, 0, 1, 1], [], []>} : vector<8x32xf32>, vector<32x64xf32>, vector<8x64xf32> -> vector<8x64xf32>
    %c0_39 = arith.constant 0 : index
    %c0_40 = arith.constant 0 : index
    %c0_41 = arith.constant 0 : index
    %88 = vector.load %arg8[%c0_39, %c0_40, %c0_41] : memref<2x1x64xf32, #tpu.memory_space<vmem>>, vector<1x1x64xf32>
    %89 = vector.shape_cast %88 : vector<1x1x64xf32> to vector<1x64xf32>
    %90 = vector.broadcast %89 : vector<1x64xf32> to vector<8x64xf32>
    %91 = arith.addf %87, %90 : vector<8x64xf32>
    %cst_42 = arith.constant 0.000000e+00 : f32
    %92 = vector.broadcast %cst_42 : f32 to vector<8x64xf32>
    %93 = arith.maximumf %91, %92 : vector<8x64xf32>
    %c0_43 = arith.constant 0 : index
    %c0_44 = arith.constant 0 : index
    %c0_45 = arith.constant 0 : index
    %94 = vector.load %arg9[%c0_43, %c0_44, %c0_45] : memref<2x64x32xf32, #tpu.memory_space<vmem>>, vector<1x64x32xf32>
    %95 = vector.shape_cast %94 : vector<1x64x32xf32> to vector<64x32xf32>
    %cst_46 = arith.constant dense<0.000000e+00> : vector<8x32xf32>
    %96 = tpu.matmul %93, %95, %cst_46 {dimension_numbers = #tpu.dot_dimension_numbers<[1], [0], [0], [1], [0, 0, 1, 1], [], []>} : vector<8x64xf32>, vector<64x32xf32>, vector<8x32xf32> -> vector<8x32xf32>
    %c0_47 = arith.constant 0 : index
    %c0_48 = arith.constant 0 : index
    %c0_49 = arith.constant 0 : index
    %97 = vector.load %arg10[%c0_47, %c0_48, %c0_49] : memref<2x1x32xf32, #tpu.memory_space<vmem>>, vector<1x1x32xf32>
    %98 = vector.shape_cast %97 : vector<1x1x32xf32> to vector<1x32xf32>
    %99 = vector.broadcast %98 : vector<1x32xf32> to vector<8x32xf32>
    %100 = arith.addf %96, %99 : vector<8x32xf32>
    %101 = arith.addf %100, %84 : vector<8x32xf32>
    %c0_50 = arith.constant 0 : index
    %c0_51 = arith.constant 0 : index
    %c0_52 = arith.constant 0 : index
    %102 = vector.load %arg11[%c0_50, %c0_51, %c0_52] : memref<2x1x32xf32, #tpu.memory_space<vmem>>, vector<1x1x32xf32>
    %103 = vector.shape_cast %102 : vector<1x1x32xf32> to vector<1x32xf32>
    %c0_53 = arith.constant 0 : index
    %c0_54 = arith.constant 0 : index
    %c0_55 = arith.constant 0 : index
    %104 = vector.load %arg12[%c0_53, %c0_54, %c0_55] : memref<2x1x32xf32, #tpu.memory_space<vmem>>, vector<1x1x32xf32>
    %105 = vector.shape_cast %104 : vector<1x1x32xf32> to vector<1x32xf32>
    %cst_56 = arith.constant dense<0.000000e+00> : vector<8xf32>
    %106 = vector.multi_reduction <add>, %101, %cst_56 [1] : vector<8x32xf32> to vector<8xf32>
    %107 = vector.shape_cast %106 : vector<8xf32> to vector<8x1xf32>
    %cst_57 = arith.constant 3.200000e+01 : f32
    %108 = vector.broadcast %cst_57 : f32 to vector<8x1xf32>
    %109 = arith.divf %107, %108 : vector<8x1xf32>
    %110 = vector.broadcast %109 : vector<8x1xf32> to vector<8x32xf32>
    %111 = arith.subf %101, %110 : vector<8x32xf32>
    %112 = arith.mulf %111, %111 : vector<8x32xf32>
    %cst_58 = arith.constant dense<0.000000e+00> : vector<8xf32>
    %113 = vector.multi_reduction <add>, %112, %cst_58 [1] : vector<8x32xf32> to vector<8xf32>
    %114 = vector.shape_cast %113 : vector<8xf32> to vector<8x1xf32>
    %cst_59 = arith.constant 3.200000e+01 : f32
    %115 = vector.broadcast %cst_59 : f32 to vector<8x1xf32>
    %116 = arith.divf %114, %115 : vector<8x1xf32>
    %117 = vector.broadcast %109 : vector<8x1xf32> to vector<8x32xf32>
    %118 = arith.subf %101, %117 : vector<8x32xf32>
    %cst_60 = arith.constant 9.99999974E-6 : f32
    %119 = vector.broadcast %cst_60 : f32 to vector<8x1xf32>
    %120 = arith.addf %116, %119 : vector<8x1xf32>
    %121 = math.rsqrt %120 : vector<8x1xf32>
    %122 = vector.broadcast %121 : vector<8x1xf32> to vector<8x32xf32>
    %123 = arith.mulf %118, %122 : vector<8x32xf32>
    %124 = vector.broadcast %103 : vector<1x32xf32> to vector<8x32xf32>
    %125 = arith.mulf %123, %124 : vector<8x32xf32>
    %126 = vector.broadcast %105 : vector<1x32xf32> to vector<8x32xf32>
    %127 = arith.addf %125, %126 : vector<8x32xf32>
    %c1 = arith.constant 1 : index
    %c0_61 = arith.constant 0 : index
    %c0_62 = arith.constant 0 : index
    %128 = vector.load %arg2[%c1, %c0_61, %c0_62] : memref<2x32x384xf32, #tpu.memory_space<vmem>>, vector<1x32x384xf32>
    %129 = vector.shape_cast %128 : vector<1x32x384xf32> to vector<32x384xf32>
    %cst_63 = arith.constant dense<0.000000e+00> : vector<8x384xf32>
    %130 = tpu.matmul %127, %129, %cst_63 {dimension_numbers = #tpu.dot_dimension_numbers<[1], [0], [0], [1], [0, 0, 1, 1], [], []>} : vector<8x32xf32>, vector<32x384xf32>, vector<8x384xf32> -> vector<8x384xf32>
    %131 = vector.extract_strided_slice %130 {offsets = [0, 0], sizes = [8, 128], strides = [1, 1]} : vector<8x384xf32> to vector<8x128xf32>
    %132 = vector.extract_strided_slice %130 {offsets = [0, 128], sizes = [8, 128], strides = [1, 1]} : vector<8x384xf32> to vector<8x128xf32>
    %133 = vector.extract_strided_slice %130 {offsets = [0, 256], sizes = [8, 128], strides = [1, 1]} : vector<8x384xf32> to vector<8x128xf32>
    %134 = vector.extract_strided_slice %131 {offsets = [0, 0], sizes = [8, 32], strides = [1, 1]} : vector<8x128xf32> to vector<8x32xf32>
    %135 = vector.extract_strided_slice %132 {offsets = [0, 0], sizes = [8, 32], strides = [1, 1]} : vector<8x128xf32> to vector<8x32xf32>
    %cst_64 = arith.constant dense<0.000000e+00> : vector<8x8xf32>
    %136 = tpu.matmul %134, %135, %cst_64 {dimension_numbers = #tpu.dot_dimension_numbers<[1], [1], [0], [0], [0, 0, 1, 0], [], []>} : vector<8x32xf32>, vector<8x32xf32>, vector<8x8xf32> -> vector<8x8xf32>
    %137 = vector.extract_strided_slice %131 {offsets = [0, 32], sizes = [8, 32], strides = [1, 1]} : vector<8x128xf32> to vector<8x32xf32>
    %138 = vector.extract_strided_slice %132 {offsets = [0, 32], sizes = [8, 32], strides = [1, 1]} : vector<8x128xf32> to vector<8x32xf32>
    %cst_65 = arith.constant dense<0.000000e+00> : vector<8x8xf32>
    %139 = tpu.matmul %137, %138, %cst_65 {dimension_numbers = #tpu.dot_dimension_numbers<[1], [1], [0], [0], [0, 0, 1, 0], [], []>} : vector<8x32xf32>, vector<8x32xf32>, vector<8x8xf32> -> vector<8x8xf32>
    %140 = vector.extract_strided_slice %131 {offsets = [0, 64], sizes = [8, 32], strides = [1, 1]} : vector<8x128xf32> to vector<8x32xf32>
    %141 = vector.extract_strided_slice %132 {offsets = [0, 64], sizes = [8, 32], strides = [1, 1]} : vector<8x128xf32> to vector<8x32xf32>
    %cst_66 = arith.constant dense<0.000000e+00> : vector<8x8xf32>
    %142 = tpu.matmul %140, %141, %cst_66 {dimension_numbers = #tpu.dot_dimension_numbers<[1], [1], [0], [0], [0, 0, 1, 0], [], []>} : vector<8x32xf32>, vector<8x32xf32>, vector<8x8xf32> -> vector<8x8xf32>
    %143 = vector.extract_strided_slice %131 {offsets = [0, 96], sizes = [8, 32], strides = [1, 1]} : vector<8x128xf32> to vector<8x32xf32>
    %144 = vector.extract_strided_slice %132 {offsets = [0, 96], sizes = [8, 32], strides = [1, 1]} : vector<8x128xf32> to vector<8x32xf32>
    %cst_67 = arith.constant dense<0.000000e+00> : vector<8x8xf32>
    %145 = tpu.matmul %143, %144, %cst_67 {dimension_numbers = #tpu.dot_dimension_numbers<[1], [1], [0], [0], [0, 0, 1, 0], [], []>} : vector<8x32xf32>, vector<8x32xf32>, vector<8x8xf32> -> vector<8x8xf32>
    %146 = tpu.concatenate %136, %139, %142, %145 in 0 : vector<8x8xf32>, vector<8x8xf32>, vector<8x8xf32>, vector<8x8xf32> -> vector<32x8xf32>
    %cst_68 = arith.constant 0.176776692 : f32
    %147 = vector.broadcast %cst_68 : f32 to vector<32x8xf32>
    %148 = arith.mulf %146, %147 : vector<32x8xf32>
    %cst_69 = arith.constant dense<0xFF800000> : vector<32xf32>
    %149 = vector.multi_reduction <maximumf>, %148, %cst_69 [1] : vector<32x8xf32> to vector<32xf32>
    %150 = vector.shape_cast %149 : vector<32xf32> to vector<32x1xf32>
    %151 = vector.broadcast %150 : vector<32x1xf32> to vector<32x8xf32>
    %152 = arith.subf %148, %151 : vector<32x8xf32>
    %153 = math.exp %152 : vector<32x8xf32>
    %cst_70 = arith.constant dense<0.000000e+00> : vector<32xf32>
    %154 = vector.multi_reduction <add>, %153, %cst_70 [1] : vector<32x8xf32> to vector<32xf32>
    %155 = vector.shape_cast %154 : vector<32xf32> to vector<32x1xf32>
    %156 = tpu.reciprocal %155 {approx = true} : vector<32x1xf32> -> vector<32x1xf32>
    %157 = vector.broadcast %156 : vector<32x1xf32> to vector<32x8xf32>
    %158 = arith.mulf %153, %157 : vector<32x8xf32>
    %159 = vector.extract_strided_slice %158 {offsets = [0, 0], sizes = [8, 8], strides = [1, 1]} : vector<32x8xf32> to vector<8x8xf32>
    %160 = arith.addf %47, %159 : vector<8x8xf32>
    %161 = vector.extract_strided_slice %133 {offsets = [0, 0], sizes = [8, 32], strides = [1, 1]} : vector<8x128xf32> to vector<8x32xf32>
    %cst_71 = arith.constant dense<0.000000e+00> : vector<8x32xf32>
    %162 = tpu.matmul %159, %161, %cst_71 {dimension_numbers = #tpu.dot_dimension_numbers<[1], [0], [0], [1], [0, 0, 1, 1], [], []>} : vector<8x8xf32>, vector<8x32xf32>, vector<8x32xf32> -> vector<8x32xf32>
    %163 = vector.extract_strided_slice %158 {offsets = [8, 0], sizes = [8, 8], strides = [1, 1]} : vector<32x8xf32> to vector<8x8xf32>
    %164 = arith.addf %160, %163 : vector<8x8xf32>
    %165 = vector.extract_strided_slice %133 {offsets = [0, 32], sizes = [8, 32], strides = [1, 1]} : vector<8x128xf32> to vector<8x32xf32>
    %cst_72 = arith.constant dense<0.000000e+00> : vector<8x32xf32>
    %166 = tpu.matmul %163, %165, %cst_72 {dimension_numbers = #tpu.dot_dimension_numbers<[1], [0], [0], [1], [0, 0, 1, 1], [], []>} : vector<8x8xf32>, vector<8x32xf32>, vector<8x32xf32> -> vector<8x32xf32>
    %167 = vector.extract_strided_slice %158 {offsets = [16, 0], sizes = [8, 8], strides = [1, 1]} : vector<32x8xf32> to vector<8x8xf32>
    %168 = arith.addf %164, %167 : vector<8x8xf32>
    %169 = vector.extract_strided_slice %133 {offsets = [0, 64], sizes = [8, 32], strides = [1, 1]} : vector<8x128xf32> to vector<8x32xf32>
    %cst_73 = arith.constant dense<0.000000e+00> : vector<8x32xf32>
    %170 = tpu.matmul %167, %169, %cst_73 {dimension_numbers = #tpu.dot_dimension_numbers<[1], [0], [0], [1], [0, 0, 1, 1], [], []>} : vector<8x8xf32>, vector<8x32xf32>, vector<8x32xf32> -> vector<8x32xf32>
    %171 = vector.extract_strided_slice %158 {offsets = [24, 0], sizes = [8, 8], strides = [1, 1]} : vector<32x8xf32> to vector<8x8xf32>
    %172 = arith.addf %168, %171 : vector<8x8xf32>
    %173 = vector.extract_strided_slice %133 {offsets = [0, 96], sizes = [8, 32], strides = [1, 1]} : vector<8x128xf32> to vector<8x32xf32>
    %cst_74 = arith.constant dense<0.000000e+00> : vector<8x32xf32>
    %174 = tpu.matmul %171, %173, %cst_74 {dimension_numbers = #tpu.dot_dimension_numbers<[1], [0], [0], [1], [0, 0, 1, 1], [], []>} : vector<8x8xf32>, vector<8x32xf32>, vector<8x32xf32> -> vector<8x32xf32>
    %175 = tpu.concatenate %162, %166, %170, %174 in 1 : vector<8x32xf32>, vector<8x32xf32>, vector<8x32xf32>, vector<8x32xf32> -> vector<8x128xf32>
    %c1_75 = arith.constant 1 : index
    %c0_76 = arith.constant 0 : index
    %c0_77 = arith.constant 0 : index
    %176 = vector.load %arg3[%c1_75, %c0_76, %c0_77] : memref<2x128x32xf32, #tpu.memory_space<vmem>>, vector<1x128x32xf32>
    %177 = vector.shape_cast %176 : vector<1x128x32xf32> to vector<128x32xf32>
    %cst_78 = arith.constant dense<0.000000e+00> : vector<8x32xf32>
    %178 = tpu.matmul %175, %177, %cst_78 {dimension_numbers = #tpu.dot_dimension_numbers<[1], [0], [0], [1], [0, 0, 1, 1], [], []>} : vector<8x128xf32>, vector<128x32xf32>, vector<8x32xf32> -> vector<8x32xf32>
    %c1_79 = arith.constant 1 : index
    %c0_80 = arith.constant 0 : index
    %c0_81 = arith.constant 0 : index
    %179 = vector.load %arg4[%c1_79, %c0_80, %c0_81] : memref<2x1x32xf32, #tpu.memory_space<vmem>>, vector<1x1x32xf32>
    %180 = vector.shape_cast %179 : vector<1x1x32xf32> to vector<1x32xf32>
    %181 = vector.broadcast %180 : vector<1x32xf32> to vector<8x32xf32>
    %182 = arith.addf %178, %181 : vector<8x32xf32>
    %183 = arith.addf %182, %127 : vector<8x32xf32>
    %c1_82 = arith.constant 1 : index
    %c0_83 = arith.constant 0 : index
    %c0_84 = arith.constant 0 : index
    %184 = vector.load %arg5[%c1_82, %c0_83, %c0_84] : memref<2x1x32xf32, #tpu.memory_space<vmem>>, vector<1x1x32xf32>
    %185 = vector.shape_cast %184 : vector<1x1x32xf32> to vector<1x32xf32>
    %c1_85 = arith.constant 1 : index
    %c0_86 = arith.constant 0 : index
    %c0_87 = arith.constant 0 : index
    %186 = vector.load %arg6[%c1_85, %c0_86, %c0_87] : memref<2x1x32xf32, #tpu.memory_space<vmem>>, vector<1x1x32xf32>
    %187 = vector.shape_cast %186 : vector<1x1x32xf32> to vector<1x32xf32>
    %cst_88 = arith.constant dense<0.000000e+00> : vector<8xf32>
    %188 = vector.multi_reduction <add>, %183, %cst_88 [1] : vector<8x32xf32> to vector<8xf32>
    %189 = vector.shape_cast %188 : vector<8xf32> to vector<8x1xf32>
    %cst_89 = arith.constant 3.200000e+01 : f32
    %190 = vector.broadcast %cst_89 : f32 to vector<8x1xf32>
    %191 = arith.divf %189, %190 : vector<8x1xf32>
    %192 = vector.broadcast %191 : vector<8x1xf32> to vector<8x32xf32>
    %193 = arith.subf %183, %192 : vector<8x32xf32>
    %194 = arith.mulf %193, %193 : vector<8x32xf32>
    %cst_90 = arith.constant dense<0.000000e+00> : vector<8xf32>
    %195 = vector.multi_reduction <add>, %194, %cst_90 [1] : vector<8x32xf32> to vector<8xf32>
    %196 = vector.shape_cast %195 : vector<8xf32> to vector<8x1xf32>
    %cst_91 = arith.constant 3.200000e+01 : f32
    %197 = vector.broadcast %cst_91 : f32 to vector<8x1xf32>
    %198 = arith.divf %196, %197 : vector<8x1xf32>
    %199 = vector.broadcast %191 : vector<8x1xf32> to vector<8x32xf32>
    %200 = arith.subf %183, %199 : vector<8x32xf32>
    %cst_92 = arith.constant 9.99999974E-6 : f32
    %201 = vector.broadcast %cst_92 : f32 to vector<8x1xf32>
    %202 = arith.addf %198, %201 : vector<8x1xf32>
    %203 = math.rsqrt %202 : vector<8x1xf32>
    %204 = vector.broadcast %203 : vector<8x1xf32> to vector<8x32xf32>
    %205 = arith.mulf %200, %204 : vector<8x32xf32>
    %206 = vector.broadcast %185 : vector<1x32xf32> to vector<8x32xf32>
    %207 = arith.mulf %205, %206 : vector<8x32xf32>
    %208 = vector.broadcast %187 : vector<1x32xf32> to vector<8x32xf32>
    %209 = arith.addf %207, %208 : vector<8x32xf32>
    %c1_93 = arith.constant 1 : index
    %c0_94 = arith.constant 0 : index
    %c0_95 = arith.constant 0 : index
    %210 = vector.load %arg7[%c1_93, %c0_94, %c0_95] : memref<2x32x64xf32, #tpu.memory_space<vmem>>, vector<1x32x64xf32>
    %211 = vector.shape_cast %210 : vector<1x32x64xf32> to vector<32x64xf32>
    %cst_96 = arith.constant dense<0.000000e+00> : vector<8x64xf32>
    %212 = tpu.matmul %209, %211, %cst_96 {dimension_numbers = #tpu.dot_dimension_numbers<[1], [0], [0], [1], [0, 0, 1, 1], [], []>} : vector<8x32xf32>, vector<32x64xf32>, vector<8x64xf32> -> vector<8x64xf32>
    %c1_97 = arith.constant 1 : index
    %c0_98 = arith.constant 0 : index
    %c0_99 = arith.constant 0 : index
    %213 = vector.load %arg8[%c1_97, %c0_98, %c0_99] : memref<2x1x64xf32, #tpu.memory_space<vmem>>, vector<1x1x64xf32>
    %214 = vector.shape_cast %213 : vector<1x1x64xf32> to vector<1x64xf32>
    %215 = vector.broadcast %214 : vector<1x64xf32> to vector<8x64xf32>
    %216 = arith.addf %212, %215 : vector<8x64xf32>
    %cst_100 = arith.constant 0.000000e+00 : f32
    %217 = vector.broadcast %cst_100 : f32 to vector<8x64xf32>
    %218 = arith.maximumf %216, %217 : vector<8x64xf32>
    %c1_101 = arith.constant 1 : index
    %c0_102 = arith.constant 0 : index
    %c0_103 = arith.constant 0 : index
    %219 = vector.load %arg9[%c1_101, %c0_102, %c0_103] : memref<2x64x32xf32, #tpu.memory_space<vmem>>, vector<1x64x32xf32>
    %220 = vector.shape_cast %219 : vector<1x64x32xf32> to vector<64x32xf32>
    %cst_104 = arith.constant dense<0.000000e+00> : vector<8x32xf32>
    %221 = tpu.matmul %218, %220, %cst_104 {dimension_numbers = #tpu.dot_dimension_numbers<[1], [0], [0], [1], [0, 0, 1, 1], [], []>} : vector<8x64xf32>, vector<64x32xf32>, vector<8x32xf32> -> vector<8x32xf32>
    %c1_105 = arith.constant 1 : index
    %c0_106 = arith.constant 0 : index
    %c0_107 = arith.constant 0 : index
    %222 = vector.load %arg10[%c1_105, %c0_106, %c0_107] : memref<2x1x32xf32, #tpu.memory_space<vmem>>, vector<1x1x32xf32>
    %223 = vector.shape_cast %222 : vector<1x1x32xf32> to vector<1x32xf32>
    %224 = vector.broadcast %223 : vector<1x32xf32> to vector<8x32xf32>
    %225 = arith.addf %221, %224 : vector<8x32xf32>
    %226 = arith.addf %225, %209 : vector<8x32xf32>
    %c1_108 = arith.constant 1 : index
    %c0_109 = arith.constant 0 : index
    %c0_110 = arith.constant 0 : index
    %227 = vector.load %arg11[%c1_108, %c0_109, %c0_110] : memref<2x1x32xf32, #tpu.memory_space<vmem>>, vector<1x1x32xf32>
    %228 = vector.shape_cast %227 : vector<1x1x32xf32> to vector<1x32xf32>
    %c1_111 = arith.constant 1 : index
    %c0_112 = arith.constant 0 : index
    %c0_113 = arith.constant 0 : index
    %229 = vector.load %arg12[%c1_111, %c0_112, %c0_113] : memref<2x1x32xf32, #tpu.memory_space<vmem>>, vector<1x1x32xf32>
    %230 = vector.shape_cast %229 : vector<1x1x32xf32> to vector<1x32xf32>
    %cst_114 = arith.constant dense<0.000000e+00> : vector<8xf32>
    %231 = vector.multi_reduction <add>, %226, %cst_114 [1] : vector<8x32xf32> to vector<8xf32>
    %232 = vector.shape_cast %231 : vector<8xf32> to vector<8x1xf32>
    %cst_115 = arith.constant 3.200000e+01 : f32
    %233 = vector.broadcast %cst_115 : f32 to vector<8x1xf32>
    %234 = arith.divf %232, %233 : vector<8x1xf32>
    %235 = vector.broadcast %234 : vector<8x1xf32> to vector<8x32xf32>
    %236 = arith.subf %226, %235 : vector<8x32xf32>
    %237 = arith.mulf %236, %236 : vector<8x32xf32>
    %cst_116 = arith.constant dense<0.000000e+00> : vector<8xf32>
    %238 = vector.multi_reduction <add>, %237, %cst_116 [1] : vector<8x32xf32> to vector<8xf32>
    %239 = vector.shape_cast %238 : vector<8xf32> to vector<8x1xf32>
    %cst_117 = arith.constant 3.200000e+01 : f32
    %240 = vector.broadcast %cst_117 : f32 to vector<8x1xf32>
    %241 = arith.divf %239, %240 : vector<8x1xf32>
    %242 = vector.broadcast %234 : vector<8x1xf32> to vector<8x32xf32>
    %243 = arith.subf %226, %242 : vector<8x32xf32>
    %cst_118 = arith.constant 9.99999974E-6 : f32
    %244 = vector.broadcast %cst_118 : f32 to vector<8x1xf32>
    %245 = arith.addf %241, %244 : vector<8x1xf32>
    %246 = math.rsqrt %245 : vector<8x1xf32>
    %247 = vector.broadcast %246 : vector<8x1xf32> to vector<8x32xf32>
    %248 = arith.mulf %243, %247 : vector<8x32xf32>
    %249 = vector.broadcast %228 : vector<1x32xf32> to vector<8x32xf32>
    %250 = arith.mulf %248, %249 : vector<8x32xf32>
    %251 = vector.broadcast %230 : vector<1x32xf32> to vector<8x32xf32>
    %252 = arith.addf %250, %251 : vector<8x32xf32>
    %cst_119 = arith.constant 1.250000e-01 : f32
    %253 = vector.broadcast %cst_119 : f32 to vector<8x8xf32>
    %254 = arith.mulf %172, %253 : vector<8x8xf32>
    %c0_120 = arith.constant 0 : index
    %c0_121 = arith.constant 0 : index
    %c0_122 = arith.constant 0 : index
    %255 = vector.load %arg18[%c0_120, %c0_121, %c0_122] : memref<1x8x8xf32, #tpu.memory_space<vmem>>, vector<1x8x8xf32>
    %256 = vector.shape_cast %255 : vector<1x8x8xf32> to vector<8x8xf32>
    %257 = vector.shape_cast %254 : vector<8x8xf32> to vector<1x8x8xf32>
    tpu.vector_store %arg18[%c0_120, %c0_121, %c0_122], %257 {strides = array<i32>} : memref<1x8x8xf32, #tpu.memory_space<vmem>>, vector<1x8x8xf32>,
    %c0_123 = arith.constant 0 : index
    %c0_124 = arith.constant 0 : index
    %258 = vector.load %arg13[%c0_123, %c0_124] : memref<1x32xf32, #tpu.memory_space<vmem>>, vector<1x32xf32>
    %cst_125 = arith.constant dense<0.000000e+00> : vector<1x8xf32>
    %259 = tpu.matmul %258, %252, %cst_125 {dimension_numbers = #tpu.dot_dimension_numbers<[1], [1], [0], [0], [0, 0, 1, 0], [], []>} : vector<1x32xf32>, vector<8x32xf32>, vector<1x8xf32> -> vector<1x8xf32>
    %cst_126 = arith.constant 0.176776692 : f32
    %260 = vector.broadcast %cst_126 : f32 to vector<1x8xf32>
    %261 = arith.mulf %259, %260 : vector<1x8xf32>
    %cst_127 = arith.constant dense<0xFF800000> : vector<1xf32>
    %262 = vector.multi_reduction <maximumf>, %261, %cst_127 [1] : vector<1x8xf32> to vector<1xf32>
    %263 = vector.shape_cast %262 : vector<1xf32> to vector<1x1xf32>
    %264 = vector.broadcast %263 : vector<1x1xf32> to vector<1x8xf32>
    %265 = arith.subf %261, %264 : vector<1x8xf32>
    %266 = math.exp %265 : vector<1x8xf32>
    %cst_128 = arith.constant dense<0.000000e+00> : vector<1xf32>
    %267 = vector.multi_reduction <add>, %266, %cst_128 [1] : vector<1x8xf32> to vector<1xf32>
    %268 = vector.shape_cast %267 : vector<1xf32> to vector<1x1xf32>
    %269 = tpu.reciprocal %268 {approx = true} : vector<1x1xf32> -> vector<1x1xf32>
    %270 = vector.broadcast %269 : vector<1x1xf32> to vector<1x8xf32>
    %271 = arith.mulf %266, %270 : vector<1x8xf32>
    %c0_129 = arith.constant 0 : index
    %c0_130 = arith.constant 0 : index
    %c0_131 = arith.constant 0 : index
    %272 = vector.load %arg17[%c0_129, %c0_130, %c0_131] : memref<1x1x8xf32, #tpu.memory_space<vmem>>, vector<1x1x8xf32>
    %273 = vector.shape_cast %272 : vector<1x1x8xf32> to vector<1x8xf32>
    %274 = vector.shape_cast %271 : vector<1x8xf32> to vector<1x1x8xf32>
    tpu.vector_store %arg17[%c0_129, %c0_130, %c0_131], %274 {strides = array<i32>} : memref<1x1x8xf32, #tpu.memory_space<vmem>>, vector<1x1x8xf32>,
    %cst_132 = arith.constant dense<0.000000e+00> : vector<1x32xf32>
    %275 = tpu.matmul %271, %252, %cst_132 {dimension_numbers = #tpu.dot_dimension_numbers<[1], [0], [0], [1], [0, 0, 1, 1], [], []>} : vector<1x8xf32>, vector<8x32xf32>, vector<1x32xf32> -> vector<1x32xf32>
    %c0_133 = arith.constant 0 : index
    %c0_134 = arith.constant 0 : index
    %276 = vector.load %arg14[%c0_133, %c0_134] : memref<32x2xf32, #tpu.memory_space<vmem>>, vector<32x2xf32>
    %cst_135 = arith.constant dense<0.000000e+00> : vector<1x2xf32>
    %277 = tpu.matmul %275, %276, %cst_135 {dimension_numbers = #tpu.dot_dimension_numbers<[1], [0], [0], [1], [0, 0, 1, 1], [], []>} : vector<1x32xf32>, vector<32x2xf32>, vector<1x2xf32> -> vector<1x2xf32>
    %c0_136 = arith.constant 0 : index
    %c0_137 = arith.constant 0 : index
    %278 = vector.load %arg15[%c0_136, %c0_137] : memref<1x2xf32, #tpu.memory_space<vmem>>, vector<1x2xf32>
    %279 = arith.addf %277, %278 : vector<1x2xf32>
    %cst_138 = arith.constant dense<0xFF800000> : vector<1xf32>
    %280 = vector.multi_reduction <maximumf>, %279, %cst_138 [1] : vector<1x2xf32> to vector<1xf32>
    %281 = vector.shape_cast %280 : vector<1xf32> to vector<1x1xf32>
    %282 = vector.broadcast %281 : vector<1x1xf32> to vector<1x2xf32>
    %283 = arith.subf %279, %282 : vector<1x2xf32>
    %284 = math.exp %283 : vector<1x2xf32>
    %cst_139 = arith.constant dense<0.000000e+00> : vector<1xf32>
    %285 = vector.multi_reduction <add>, %284, %cst_139 [1] : vector<1x2xf32> to vector<1xf32>
    %286 = vector.shape_cast %285 : vector<1xf32> to vector<1x1xf32>
    %287 = math.log %286 : vector<1x1xf32>
    %288 = arith.addf %281, %287 : vector<1x1xf32>
    %289 = vector.broadcast %288 : vector<1x1xf32> to vector<1x2xf32>
    %290 = arith.subf %279, %289 : vector<1x2xf32>
    %c0_140 = arith.constant 0 : index
    %c0_141 = arith.constant 0 : index
    %c0_142 = arith.constant 0 : index
    %291 = vector.load %arg16[%c0_140, %c0_141, %c0_142] : memref<1x1x2xf32, #tpu.memory_space<vmem>>, vector<1x1x2xf32>
    %292 = vector.shape_cast %291 : vector<1x1x2xf32> to vector<1x2xf32>
    %293 = vector.shape_cast %290 : vector<1x2xf32> to vector<1x1x2xf32>
    tpu.vector_store %arg16[%c0_140, %c0_141, %c0_142], %293 {strides = array<i32>} : memref<1x1x2xf32, #tpu.memory_space<vmem>>, vector<1x1x2xf32>,
    return
  }
  func.func @transform_0(%arg0: i32) -> (i32, i32, i32) {
    %c0_i32 = arith.constant 0 : i32
    %c0_i32_0 = arith.constant 0 : i32
    %c0_i32_1 = arith.constant 0 : i32
    return %arg0, %c0_i32, %c0_i32_0 : i32, i32, i32
  }
  func.func @transform_1(%arg0: i32) -> (i32, i32, i32) {
    %c0_i32 = arith.constant 0 : i32
    %c0_i32_0 = arith.constant 0 : i32
    %c0_i32_1 = arith.constant 0 : i32
    %c0_i32_2 = arith.constant 0 : i32
    return %c0_i32, %c0_i32_0, %c0_i32_1 : i32, i32, i32
  }
  func.func @transform_2(%arg0: i32) -> (i32, i32, i32) {
    %c0_i32 = arith.constant 0 : i32
    %c0_i32_0 = arith.constant 0 : i32
    %c0_i32_1 = arith.constant 0 : i32
    %c0_i32_2 = arith.constant 0 : i32
    return %c0_i32, %c0_i32_0, %c0_i32_1 : i32, i32, i32
  }
  func.func @transform_3(%arg0: i32) -> (i32, i32, i32) {
    %c0_i32 = arith.constant 0 : i32
    %c0_i32_0 = arith.constant 0 : i32
    %c0_i32_1 = arith.constant 0 : i32
    %c0_i32_2 = arith.constant 0 : i32
    return %c0_i32, %c0_i32_0, %c0_i32_1 : i32, i32, i32
  }
  func.func @transform_4(%arg0: i32) -> (i32, i32, i32) {
    %c0_i32 = arith.constant 0 : i32
    %c0_i32_0 = arith.constant 0 : i32
    %c0_i32_1 = arith.constant 0 : i32
    %c0_i32_2 = arith.constant 0 : i32
    return %c0_i32, %c0_i32_0, %c0_i32_1 : i32, i32, i32
  }
  func.func @transform_5(%arg0: i32) -> (i32, i32, i32) {
    %c0_i32 = arith.constant 0 : i32
    %c0_i32_0 = arith.constant 0 : i32
    %c0_i32_1 = arith.constant 0 : i32
    %c0_i32_2 = arith.constant 0 : i32
    return %c0_i32, %c0_i32_0, %c0_i32_1 : i32, i32, i32
  }
  func.func @transform_6(%arg0: i32) -> (i32, i32, i32) {
    %c0_i32 = arith.constant 0 : i32
    %c0_i32_0 = arith.constant 0 : i32
    %c0_i32_1 = arith.constant 0 : i32
    %c0_i32_2 = arith.constant 0 : i32
    return %c0_i32, %c0_i32_0, %c0_i32_1 : i32, i32, i32
  }
  func.func @transform_7(%arg0: i32) -> (i32, i32, i32) {
    %c0_i32 = arith.constant 0 : i32
    %c0_i32_0 = arith.constant 0 : i32
    %c0_i32_1 = arith.constant 0 : i32
    %c0_i32_2 = arith.constant 0 : i32
    return %c0_i32, %c0_i32_0, %c0_i32_1 : i32, i32, i32
  }
  func.func @transform_8(%arg0: i32) -> (i32, i32, i32) {
    %c0_i32 = arith.constant 0 : i32
    %c0_i32_0 = arith.constant 0 : i32
    %c0_i32_1 = arith.constant 0 : i32
    %c0_i32_2 = arith.constant 0 : i32
    return %c0_i32, %c0_i32_0, %c0_i32_1 : i32, i32, i32
  }
  func.func @transform_9(%arg0: i32) -> (i32, i32, i32) {
    %c0_i32 = arith.constant 0 : i32
    %c0_i32_0 = arith.constant 0 : i32
    %c0_i32_1 = arith.constant 0 : i32
    %c0_i32_2 = arith.constant 0 : i32
    return %c0_i32, %c0_i32_0, %c0_i32_1 : i32, i32, i32
  }
  func.func @transform_10(%arg0: i32) -> (i32, i32, i32) {
    %c0_i32 = arith.constant 0 : i32
    %c0_i32_0 = arith.constant 0 : i32
    %c0_i32_1 = arith.constant 0 : i32
    %c0_i32_2 = arith.constant 0 : i32
    return %c0_i32, %c0_i32_0, %c0_i32_1 : i32, i32, i32
  }
  func.func @transform_11(%arg0: i32) -> (i32, i32, i32) {
    %c0_i32 = arith.constant 0 : i32
    %c0_i32_0 = arith.constant 0 : i32
    %c0_i32_1 = arith.constant 0 : i32
    %c0_i32_2 = arith.constant 0 : i32
    return %c0_i32, %c0_i32_0, %c0_i32_1 : i32, i32, i32
  }
  func.func @transform_12(%arg0: i32) -> (i32, i32) {
    %c0_i32 = arith.constant 0 : i32
    %c0_i32_0 = arith.constant 0 : i32
    %c0_i32_1 = arith.constant 0 : i32
    return %c0_i32, %c0_i32_0 : i32, i32
  }
  func.func @transform_13(%arg0: i32) -> (i32, i32) {
    %c0_i32 = arith.constant 0 : i32
    %c0_i32_0 = arith.constant 0 : i32
    %c0_i32_1 = arith.constant 0 : i32
    return %c0_i32, %c0_i32_0 : i32, i32
  }
  func.func @transform_14(%arg0: i32) -> (i32, i32) {
    %c0_i32 = arith.constant 0 : i32
    %c0_i32_0 = arith.constant 0 : i32
    %c0_i32_1 = arith.constant 0 : i32
    return %c0_i32, %c0_i32_0 : i32, i32
  }
  func.func @transform_15(%arg0: i32) -> (i32, i32, i32) {
    %c0_i32 = arith.constant 0 : i32
    %c0_i32_0 = arith.constant 0 : i32
    %c0_i32_1 = arith.constant 0 : i32
    return %arg0, %c0_i32, %c0_i32_0 : i32, i32, i32
  }
  func.func @transform_16(%arg0: i32) -> (i32, i32, i32) {
    %c0_i32 = arith.constant 0 : i32
    %c0_i32_0 = arith.constant 0 : i32
    %c0_i32_1 = arith.constant 0 : i32
    return %arg0, %c0_i32, %c0_i32_0 : i32, i32, i32
  }
  func.func @transform_17(%arg0: i32) -> (i32, i32, i32) {
    %c0_i32 = arith.constant 0 : i32
    %c0_i32_0 = arith.constant 0 : i32
    %c0_i32_1 = arith.constant 0 : i32
    return %arg0, %c0_i32, %c0_i32_0 : i32, i32, i32
  }
}

</mosaic_0001>

<bundles_post_ra>
// kernel: categ_criscas_forward.1
= control target key start
LH: loop header
LB: loop body
LE: loop exit
PB: predicated region body
PF: predicated region fallthrough
CT: control target
= control target key end

     0   :  { %s4944_s0 = inlined_call_operand.vmem [shape: f32[2,8,32], index: 0, kind: input, shape index: {}]   ;;  %s4945_s1 = inlined_call_operand.vmem [shape: f32[2,32,384], index: 1, kind: input, shape index: {}]   ;;  %s4946_s2 = inlined_call_operand.vmem [shape: f32[2,128,32], index: 2, kind: input, shape index: {}]   ;;  %s4947_s3 = inlined_call_operand.vmem [shape: f32[2,1,32], index: 3, kind: input, shape index: {}]   ;;  %s4948_s4 = inlined_call_operand.vmem [shape: f32[2,1,32], index: 4, kind: input, shape index: {}]   ;;  %s4949_s5 = inlined_call_operand.vmem [shape: f32[2,1,32], index: 5, kind: input, shape index: {}]   ;;  %s4950_s6 = inlined_call_operand.vmem [shape: f32[2,32,64], index: 6, kind: input, shape index: {}]   ;;  %s4951_s7 = inlined_call_operand.vmem [shape: f32[2,1,64], index: 7, kind: input, shape index: {}]   ;;  %s4952_s8 = inlined_call_operand.vmem [shape: f32[2,64,32], index: 8, kind: input, shape index: {}]   ;;  %s4953_s9 = inlined_call_operand.vmem [shape: f32[2,1,32], index: 9, kind: input, shape index: {}]   ;;  %s4954_s10 = inlined_call_operand.vmem [shape: f32[2,1,32], index: 10, kind: input, shape index: {}]   ;;  %s4955_s11 = inlined_call_operand.vmem [shape: f32[2,1,32], index: 11, kind: input, shape index: {}]   ;;  %s4956_s12 = inlined_call_operand.vmem [shape: f32[1,32], index: 12, kind: input, shape index: {}]   ;;  %s4957_s13 = inlined_call_operand.vmem [shape: f32[32,2], index: 13, kind: input, shape index: {}]   ;;  %s4958_s14 = inlined_call_operand.vmem [shape: f32[1,2], index: 14, kind: input, shape index: {}]   ;;  %s4959_s15 = inlined_call_operand.hbm [shape: f32[2,1,2], index: 15, kind: output, shape index: {0}]   ;;  %s4960_s16 = inlined_call_operand.hbm [shape: f32[2,1,8], index: 16, kind: output, shape index: {1}]   ;;  %s4961_s17 = inlined_call_operand.hbm [shape: f32[2,8,8], index: 17, kind: output, shape index: {2}]  }
   0x1   :  { %4977 = sst [smem:[#allocation15_spill]] %s4944_s0 }
   0x2   :  { %4978 = sst [smem:[#allocation16_spill]] %s4945_s1 }
   0x3   :  { %4979 = sst [smem:[#allocation17_spill]] %s4946_s2 }
   0x4   :  { %4980 = sst [smem:[#allocation18_spill]] %s4947_s3 }
   0x5   :  { %4981 = sst [smem:[#allocation19_spill]] %s4959_s15 }
   0x6   :  { %23 = vsyncpa [#allocation3], 0 }
   0x7   :  { %25 = vsyncpa [#allocation3 + $0x1], 0 }
   0x8   :  { %26 = vsyncpa [#allocation5], 0 }
   0x9   :  { %28 = vsyncpa [#allocation5 + $0x1], 0  ;;  %s4237_s24 = smov 0   ;;  %s4239_s25 = smov 0  }
   0xa   :  { %s4241_s26 = smov 0   ;;  %s4243_s27 = smov 0  }
   0xb LB: > { %4982 = sst [smem:[#allocation9_spill]] %s4124_s24  ;;  %s4258_s28 = sadd.s32 4294967295, %s4136_s27   ;;  %s4136_s27 = sphi %s4243_s27, %s5003_s27   ;;  %s4132_s26 = sphi %s4241_s26, %s5005_s26   ;;  %s4128_s25 = sphi %s4239_s25, %s5007_s25   ;;  %s4124_s24 = sphi %s4237_s24, %s5006_s24  }
   0xc   : > { %4983 = sst [smem:[#allocation10_spill]] %s4132_s26  ;;  %s4963_s29 = sadd.s32 4294967294, %s4136_s27  }
   0xd   : > { %4984 = sst [smem:[#allocation11_spill]] %s4136_s27  ;;  %s4262_s0 = sadd.s32 1, %s4136_s27  }
   0xe   : > { %4985 = sst [smem:[#allocation12_spill]] %s4262_s0  ;;  %s361_s30 = sadd.s32 1, %s4132_s26 }
   0xf   : > { %s358_s18 = ssub.s32 %s4136_s27, %s4262_s0  ;;  %p371_p0 = scmp.ne.s32.totalorder %s4132_s26, %s4128_s25 }
  0x10   : > { %p359_p1 = scmp.eq.s32.totalorder %s358_s18, 0  ;;  %p372_p2 = scmp.eq.s32.totalorder %s4258_s28, 1 }
  0x11   : > { %p377_p3 = scmp.ne.s32.totalorder %s4128_s25, %s4124_s24  ;;  %p378_p4 = scmp.eq.s32.totalorder %s4963_s29, 1 }
  0x12   : > { %s4275_s19 = scalar_select %p359_p1, %s4132_s26, %s361_s30  }
  0x13   : > { %p4277_p5 = por %p372_p2, %p371_p0  ;;  %p4281_p6 = por %p378_p4, %p377_p3 }
  0x14   : > { %4986 = sst [smem:[#allocation13_spill]] %s4275_s19  ;;  %p3321_p7 = scmp.ge.s32.totalorder %s4136_s27, 1 }
  0x15   : > { %s4988_s20 = scalar_select %p4281_p6, 1, 0 }
  0x16   : > { %p497_p8 = scmp.lt.s32.totalorder %s4136_s27, 3 }
  0x17   : > { %4989 = sst [smem:[#allocation14_spill]] %s4988_s20 }
  0x18   : > { %p498_p9 = pnand %p3321_p7, %p497_p8 }
  0x19   : > { %s4990_s23 = sld [smem:[#allocation16_spill]] (!%p498_p9)  ;;  %p556_p10 = scmp.lt.s32.totalorder (!%p498_p9), %s4258_s28, 1  ;;  %v4138_v7 = vmov (!%p498_p9), 0.0   ;;  %v4139_v12 = vmov (!%p498_p9), 0.0|0.0   ;;  %vm573_vm0 = vcmask (!%p498_p9), 261120   ;;  %vm4140_vm1 = vmmov (!%p498_p9), 0  }
  0x1a   : > { %501 = sbr.rel (%p498_p9) target bundleno = 6272 (0x1880), region = 80  ;;  %641 = vmatprep.mubr.f32.mxu0 (!%p498_p9), %v4138_v7  ;;  %3801 = vmatprep.subr.bf16.mxu1 (!%p498_p9), %v4139_v12  ;;  %s4991_s27 = sld [smem:[#allocation15_spill]] (!%p498_p9)  ;;  %vm1032_vm2 = vcmask (!%p498_p9), 64512   ;;  %vm1396_vm3 = vcmask (!%p498_p9), 523264   ;;  %vm1398_vm4 = vcmask (!%p498_p9), 785408   ;;  %vm2979_vm5 = vcmask (!%p498_p9), 57344  }
  0x1b   : > { %3548 = vmatprep.mubr.msk.f32.mxu1 (!%p498_p9), %vm4140_vm1, %v4138_v7  ;;  %s4992_s2 = sld [smem:[#allocation17_spill]] (!%p498_p9)  ;;  %s4993_s3 = sld [smem:[#allocation18_spill]] (!%p498_p9)  ;;  %vm3143_vm6 = vcmask (!%p498_p9), 8192  }
  0x1c   : > { %s4994_s20 = smov (!%p498_p9), 32   ;;  %s4647_s18 = sand.u32 (!%p498_p9), 1, %s4128_s25  }
  0x1d   : > { %s3322_s21 = sshll.u32 (!%p498_p9), %s4647_s18, 3  ;;  %s3162_s24 = sand.u32 (!%p498_p9), 1, %s4258_s28  }
  0x1f   : > { %v562_v0 = vld [vmem:[%s4990_s23 + $0x8] sm:$0xff] (!%p498_p9)  ;;  %v565_v1 = vld [vmem:[%s4990_s23 + $0x20] sm:$0xff] (!%p498_p9)  ;;  %v564_v4 = vld [vmem:[%s4990_s23 + $0x18] sm:$0xff] (!%p498_p9) }
  0x20   : > { %v561_v2 = vld [vmem:[%s4990_s23] sm:$0xff] (!%p498_p9)  ;;  %v3793_v3 = vpack.c.bf16 (!%p498_p9), %v565_v1, %v562_v0  ;;  %v568_v5 = vld [vmem:[%s4990_s23 + $0x38] sm:$0xff] (!%p498_p9)  ;;  %v571_v6 = vld [vmem:[%s4990_s23 + $0x50] sm:$0xff] (!%p498_p9) }
  0x21   : > { %v3795_v8 = vpack.c.bf16 %v564_v4, %v561_v2  ;;  %v3797_v9 = vpack.c.bf16 %v571_v6, %v568_v5  ;;  %v567_v10 = vld [vmem:[%s4990_s23 + $0x30] sm:$0xff]  ;;  %v570_v11 = vld [vmem:[%s4990_s23 + $0x48] sm:$0xff]  ;;  %s557_s0 = scalar_select %p556_p10, %s4258_s28, 1  ;;  %v569_v15 = vld [vmem:[%s4990_s23 + $0x40] sm:$0xff] }
  0x22   : > { %v563_v13 = vld [vmem:[%s4990_s23 + $0x10] sm:$0xff]  ;;  %3794 = vmatprep.subr.bf16.mxu0 %v3793_v3  ;;  %v566_v14 = vld [vmem:[%s4990_s23 + $0x28] sm:$0xff]  ;;  %v572_v16 = vld [vmem:[%s4990_s23 + $0x58] sm:$0xff]  ;;  %v3799_v17 = vpack.c.bf16 %v570_v11, %v567_v10 }
  0x23   : > { %3796 = vmatpush1.bf16.msra.mxu0 %v3795_v8  ;;  %s3323_s26 = sshll.u32 %s557_s0, 3  ;;  %v3802_v18 = vpack.c.bf16 %v566_v14, %v563_v13  ;;  %v3805_v19 = vpack.c.bf16 %v572_v16, %v569_v15  ;;  %s4972_s0 = smov 32  }
  0x24   : > { %3798 = vmatprep.subr.bf16.mxu0 %v3797_v9  ;;  %s559_s15 = scalar_lea.vmem %s4991_s27, %s3323_s26  ;;  %s4974_s27 = smov 96  }
  0x25   : > { %3803 = vmatpush3.bf16.msra.mxu1 %v3802_v18  ;;  %v4331_v20 = vld [vmem:[%s559_s15] sm:$0xff]  ;;  %s4975_s15 = smov 64   ;;  %s4845_s26 = scalar_lea.sflag [#allocation5], %s3162_s24 }
  0x26   : > { %3804 = vmatprep.subr.bf16.mxu1 %v4139_v12 }
  0x27   : > { %3800 = vmatpush1.bf16.msra.mxu0 %v3799_v17 }
  0x28   : > { %3561 = vmatprep.subr.mxu0 %v4138_v7 }
  0x29   : > { %3806 = vmatpush3.bf16.msra.mxu1 %v3805_v19 }
  0x2a   : > { %3324 = vmatmul.mubr.msk.f32.vlgmr.msra.gmra.mrb[0].mxu0 %vm573_vm0, %v4331_v20  ;;  %3551 = vmatprep.subr.mxu1 %v4138_v7 }
  0x2b   : > { %3563 = vmatprep.mubr.msk.f32.mxu0 %vm4140_vm1, %v4138_v7 }
  0x2c   : > { %3549 = vmatmul.mubr.msk.f32.vlgmr.msra.gmra.mrb[0].mxu1 %vm573_vm0, %v4331_v20 }
  0x2d   : > { %3553 = vmatprep.mubr.msk.f32.mxu1 %vm4140_vm1, %v4138_v7 }
  0xfd   : > { %v643_v21 = vpop.f32.mrb[0].mxu0 }
  0xfe   : > { %v645_v22 = vpop.f32.mrb[1].mxu0 }
  0xff   : > { %874 = vrot.lane.b32.xlu1 %v645_v22, %s4975_s15  ;;  %796 = vrot.lane.b32.xlu0 %v645_v22, %s4974_s27  ;;  %v4356_v23 = vpop.f32.mrb[0].mxu1 }
 0x100   : > { %3552 = vmatpush3.xpose.msk.msra.mxu1 %vm573_vm0, %v645_v22  ;;  %v3550_v24 = vpop.f32.mrb[1].mxu1 }
 0x101   : > { %3556 = vmatprep.subr.mxu1 %v4138_v7  ;;  %v1400_v24 = vld [vmem:[%s4992_s2] sm:$0xff] }
 0x103   : > { %3554 = vmatmul.mubr.msk.f32.vlgmr.msra.gmra.mrb[2].mxu1 %vm573_vm0, %v643_v21  ;;  %952 = vrot.lane.b32.xlu1 %v645_v22, %s4972_s0 }
 0x104   : > { %794 = vrot.lane.b32.xlu0 %v643_v21, %s4974_s27  ;;  %3558 = vmatprep.mubr.msk.f32.mxu1 %vm4140_vm1, %v4138_v7 }
 0x107   : > { %950 = vrot.lane.b32.xlu1 %v643_v21, %s4972_s0 }
 0x108   : > { %872 = vrot.lane.b32.xlu0 %v643_v21, %s4975_s15 }
 0x171   : > { %v875_v25 = vpop.permute.xlu1 %874  ;;  %v797_v26 = vpop.permute.xlu0 %796 }
 0x172   : > { %3557 = vmatpush3.xpose.msk.msra.mxu1 %vm573_vm0, %v797_v26  ;;  %3562 = vmatpush3.xpose.msk.msra.mxu0 %vm573_vm0, %v875_v25  ;;  %v1401_v25 = vld [vmem:[%s4992_s2 + $0x8] sm:$0xff]  ;;  %v1402_v26 = vld [vmem:[%s4992_s2 + $0x10] sm:$0xff] }
 0x173   : > { %3566 = vmatprep.subr.mxu1 %v4138_v7  ;;  %3571 = vmatprep.subr.mxu0 %v4138_v7 }
 0x175   : > { %v953_v27 = vpop.permute.xlu1 %952 }
 0x176   : > { %v795_v28 = vpop.permute.xlu0 %794 }
 0x177   : > { %3559 = vmatmul.mubr.msk.f32.vlgmr.msra.gmra.mrb[4].mxu1 %vm573_vm0, %v795_v28  ;;  %v1403_v28 = vld [vmem:[%s4992_s2 + $0x18] sm:$0xff] }
 0x178   : > { %3567 = vmatpush3.xpose.msk.msra.mxu1 %vm573_vm0, %v953_v27  ;;  %3568 = vmatprep.mubr.msk.f32.mxu1 %vm4140_vm1, %v4138_v7  ;;  %v3808_v27 = vpack.c.bf16 %v1401_v25, %v1400_v24  ;;  %v1609_v24 = vld [vmem:[%s4952_s8] sm:$0xff]  ;;  %v1610_v25 = vld [vmem:[%s4952_s8 + $0x8] sm:$0xff] }
 0x179   : > { %v951_v29 = vpop.permute.xlu1 %950  ;;  %3576 = vmatprep.subr.mxu1 %v4138_v7 }
 0x17a   : > { %v873_v30 = vpop.permute.xlu0 %872 }
 0x17b   : > { %3564 = vmatmul.mubr.msk.f32.vlgmr.msra.gmra.mrb[2].mxu0 %vm573_vm0, %v873_v30  ;;  %3569 = vmatmul.mubr.msk.f32.vlgmr.msra.gmra.mrb[6].mxu1 %vm573_vm0, %v951_v29  ;;  %v3811_v29 = vpack.c.bf16 %v1403_v28, %v1402_v26  ;;  %v1404_v30 = vld [vmem:[%s4992_s2 + $0x20] sm:$0xff]  ;;  %v3838_v28 = vpack.c.bf16 %v1610_v25, %v1609_v24 }
 0x17c   : > { %3572 = vmatpush3.msra.mxu0 %v4356_v23  ;;  %3573 = vmatprep.mubr.msk.f32.mxu0 %vm4140_vm1, %v4138_v7  ;;  %v3340_v26 = vld [vmem:[%s4949_s5] ss:$0 sm:$0xff] }
 0x17d   : > { %3581 = vmatprep.subr.mxu0 %v4138_v7  ;;  %3578 = vmatprep.mubr.msk.f32.mxu1 %vm4140_vm1, %v4138_v7 }
 0x1d6   : > { %v790_v31 = vpop.f32.mrb[2].mxu1 }
 0x1d7   : > { %v1028_v32 = vmul.f32 0.17677669, %v790_v31  ;;  %v3555_v33 = vpop.f32.mrb[3].mxu1  ;;  %v1405_v31 = vld [vmem:[%s4992_s2 + $0x28] sm:$0xff] }
 0x1d8   : > { %v1406_v33 = vld [vmem:[%s4992_s2 + $0x30] sm:$0xff] }
 0x1d9   : > { %v1033_v34 = vsel %vm1032_vm2, %v1028_v32, -inf }
 0x1da   : > { %1034 = vmax.xlane.f32.xlu0 %v1033_v34  ;;  %v1407_v34 = vld [vmem:[%s4992_s2 + $0x38] sm:$0xff] }
 0x24a   : > { %v868_v35 = vpop.f32.mrb[4].mxu1 }
 0x24b   : > { %v1029_v36 = vmul.f32 0.17677669, %v868_v35  ;;  %v3560_v37 = vpop.f32.mrb[5].mxu1  ;;  %v3817_v35 = vpack.c.bf16 %v1407_v34, %v1406_v33  ;;  %v1613_v33 = vld [vmem:[%s4952_s8 + $0x20] sm:$0xff]  ;;  %v1614_v34 = vld [vmem:[%s4952_s8 + $0x28] sm:$0xff] }
 0x24c   : > { %v1409_v37 = vld [vmem:[%s4992_s2 + $0x48] sm:$0xff] }
 0x24d   : > { %v1036_v38 = vsel %vm1032_vm2, %v1029_v36, -inf }
 0x24e   : > { %v946_v39 = vpop.f32.mrb[2].mxu0  ;;  %1037 = vmax.xlane.f32.xlu1 %v1036_v38  ;;  %v1024_v40 = vpop.f32.mrb[6].mxu1 }
 0x24f   : > { %v1030_v41 = vmul.f32 0.17677669, %v946_v39  ;;  %v3565_v42 = vpop.f32.mrb[3].mxu0  ;;  %v3570_v43 = vpop.f32.mrb[7].mxu1  ;;  %v1031_v44 = vmul.f32 0.17677669, %v1024_v40 }
 0x250   : > { %v1411_v42 = vld [vmem:[%s4992_s2 + $0x58] sm:$0xff] }
 0x251   : > { %v1039_v45 = vsel %vm1032_vm2, %v1030_v41, -inf  ;;  %v1042_v46 = vsel %vm1032_vm2, %v1031_v44, -inf }
 0x252   : > { %1040 = vmax.xlane.f32.xlu0 %v1039_v45  ;;  %v1413_v45 = vld [vmem:[%s4992_s2 + $0x68] sm:$0xff] }
 0x256   : > { %1043 = vmax.xlane.f32.xlu0 %v1042_v46 }
 0x25f   : > { %1153 = vrot.lane.b32.xlu1 %v4356_v23, %s4974_s27 }
 0x267   : > { %v1035_v47 = vpop.xlane.xlu0 %1034 }
 0x268   : > { %v1045_v48 = vsub.f32 %v1028_v32, %v1035_v47  ;;  %v3814_v32 = vpack.c.bf16 %v1405_v31, %v1404_v30  ;;  %v1414_v47 = vld [vmem:[%s4992_s2 + $0x70] sm:$0xff]  ;;  %v1612_v31 = vld [vmem:[%s4952_s8 + $0x18] sm:$0xff] }
 0x269   : > { %v1611_v30 = vld [vmem:[%s4952_s8 + $0x10] sm:$0xff] }
 0x26a   : > { %v1049_v49 = vmul.f32 1.442695, %v1045_v48  ;;  %v1415_v48 = vld [vmem:[%s4992_s2 + $0x78] sm:$0xff] }
 0x26c   : > { %3966 = vpow2.f32 %v1049_v49  ;;  %v3829_v49 = vpack.c.bf16 %v1415_v48, %v1414_v47 }
 0x276   : > { %v3967_v50 = vpop.eup %3966 }
 0x277   : > { %v1057_v51 = vsel %vm1032_vm2, %v3967_v50, 0.0 }
 0x283   : > { %1058 = vadd.xlane.f32.xlu1 %v1057_v51 }
 0x2db   : > { %v1038_v52 = vpop.xlane.xlu1 %1037 }
 0x2dc   : > { %v1046_v53 = vsub.f32 %v1029_v36, %v1038_v52  ;;  %v1408_v36 = vld [vmem:[%s4992_s2 + $0x40] sm:$0xff] }
 0x2dd   : > { %v3820_v40 = vpack.c.bf16 %v1409_v37, %v1408_v36  ;;  %v1615_v36 = vld [vmem:[%s4952_s8 + $0x30] sm:$0xff]  ;;  %v1616_v37 = vld [vmem:[%s4952_s8 + $0x38] sm:$0xff] }
 0x2de   : > { %v1051_v54 = vmul.f32 1.442695, %v1046_v53 }
 0x2df   : > { %v1041_v55 = vpop.xlane.xlu0 %1040  ;;  %v1154_v56 = vpop.permute.xlu1 %1153 }
 0x2e0   : > { %3968 = vpow2.f32 %v1051_v54  ;;  %v1047_v57 = vsub.f32 %v1030_v41, %v1041_v55  ;;  %3577 = vmatpush3.msra.mxu1 %v1154_v56  ;;  %v1410_v41 = vld [vmem:[%s4992_s2 + $0x50] sm:$0xff] }
 0x2e1   : > { %3586 = vmatprep.subr.mxu1 %v4138_v7  ;;  %v3823_v43 = vpack.c.bf16 %v1411_v42, %v1410_v41 }
 0x2e2   : > { %v1053_v58 = vmul.f32 1.442695, %v1047_v57 }
 0x2e3   : > { %v1044_v59 = vpop.xlane.xlu0 %1043 }
 0x2e4   : > { %3970 = vpow2.f32 %v1053_v58  ;;  %v1048_v60 = vsub.f32 %v1031_v44, %v1044_v59  ;;  %v1412_v44 = vld [vmem:[%s4992_s2 + $0x60] sm:$0xff] }
 0x2e5   : > { %v3826_v46 = vpack.c.bf16 %v1413_v45, %v1412_v44  ;;  %v3343_v44 = vld [vmem:[%s4953_s9] ss:$0 sm:$0xff] }
 0x2e6   : > { %v1055_v61 = vmul.f32 1.442695, %v1048_v60 }
 0x2e8   : > { %3972 = vpow2.f32 %v1055_v61 }
 0x2ea   : > { %v3969_v62 = vpop.eup %3968 }
 0x2eb   : > { %v1060_v63 = vsel %vm1032_vm2, %v3969_v62, 0.0 }
 0x2ec   : > { %1061 = vadd.xlane.f32.xlu0 %v1060_v63 }
 0x2ee   : > { %v3971_v0 = vpop.eup %3970 }
 0x2ef   : > { %v1063_v1 = vsel %vm1032_vm2, %v3971_v0, 0.0 }
 0x2f0   : > { %1064 = vadd.xlane.f32.xlu1 %v1063_v1 }
 0x2f2   : > { %v3973_v2 = vpop.eup %3972 }
 0x2f3   : > { %v1066_v3 = vsel %vm1032_vm2, %v3973_v2, 0.0 }
 0x2f4   : > { %1067 = vadd.xlane.f32.xlu0 %v1066_v3 }
 0x301   : > { %1307 = vrot.lane.b32.xlu1 %v4356_v23, %s4972_s0 }
 0x30a   : > { %1230 = vrot.lane.b32.xlu0 %v4356_v23, %s4975_s15 }
 0x310   : > { %v1059_v4 = vpop.xlane.xlu1 %1058 }
 0x311   : > { %3974 = vrcp.f32 %v1059_v4 }
 0x31b   : > { %v3975_v5 = vpop.eup %3974 }
 0x31c   : > { %v1073_v6 = vmul.f32 %v3975_v5, %v3967_v50 }
 0x31e   : > { %3574 = vmatmul.mubr.msk.f32.vlgmr.msra.gmra.mrb[4].mxu0 %vm1032_vm2, %v1073_v6 }
 0x31f   : > { %3583 = vmatprep.mubr.msk.f32.mxu0 %vm4140_vm1, %v4138_v7 }
 0x379   : > { %v1062_v8 = vpop.xlane.xlu0 %1061 }
 0x37a   : > { %3976 = vrcp.f32 %v1062_v8 }
 0x37d   : > { %v1065_v9 = vpop.xlane.xlu1 %1064 }
 0x37e   : > { %3978 = vrcp.f32 %v1065_v9 }
 0x381   : > { %v1068_v10 = vpop.xlane.xlu0 %1067  ;;  %v1308_v15 = vpop.permute.xlu1 %1307 }
 0x382   : > { %3980 = vrcp.f32 %v1068_v10  ;;  %v1524_v10 = vld [vmem:[%s4950_s6] sm:$0xff] }
 0x384   : > { %v3977_v11 = vpop.eup %3976 }
 0x385   : > { %v1074_v13 = vmul.f32 %v3977_v11, %v3969_v62  ;;  %v1231_v14 = vpop.permute.xlu0 %1230  ;;  %v3338_v62 = vld [vmem:[%s4993_s3] ss:$0 sm:$0xff]  ;;  %v1525_v11 = vld [vmem:[%s4950_s6 + $0x8] sm:$0xff] }
 0x386   : > { %3582 = vmatpush3.msra.mxu0 %v1231_v14  ;;  %v1527_v14 = vld [vmem:[%s4950_s6 + $0x18] sm:$0xff] }
 0x387   : > { %3579 = vmatmul.mubr.msk.f32.vlgmr.msra.gmra.mrb[8].mxu1 %vm1032_vm2, %v1074_v13  ;;  %3807 = vmatprep.subr.bf16.mxu0 %v4139_v12  ;;  %v1151_v17 = vadd.f32 %v1074_v13, %v1073_v6  ;;  %v3832_v13 = vpack.c.bf16 %v1525_v11, %v1524_v10 }
 0x388   : > { %v3979_v16 = vpop.eup %3978  ;;  %3587 = vmatpush3.msra.mxu1 %v1308_v15  ;;  %3588 = vmatprep.mubr.msk.f32.mxu1 %vm4140_vm1, %v4138_v7 }
 0x389   : > { %v1075_v18 = vmul.f32 %v3979_v16, %v3971_v0  ;;  %3831 = vmatprep.subr.bf16.mxu1 %v4139_v12 }
 0x38b   : > { %v1229_v19 = vadd.f32 %v1151_v17, %v1075_v18  ;;  %3584 = vmatmul.mubr.msk.f32.vlgmr.msra.gmra.mrb[6].mxu0 %vm1032_vm2, %v1075_v18 }
 0x38c   : > { %v3981_v21 = vpop.eup %3980  ;;  %3623 = vmatprep.mubr.msk.f32.mxu0 %vm4140_vm1, %v4138_v7  ;;  %3809 = vmatpush3.bf16.msra.mxu0 %v3808_v27 }
 0x38d   : > { %v1076_v22 = vmul.f32 %v3981_v21, %v3973_v2  ;;  %3810 = vmatprep.subr.bf16.mxu0 %v4139_v12  ;;  %v3339_v21 = vld [vmem:[%s4948_s4] ss:$0 sm:$0xff] }
 0x38f   : > { %v4401_v23 = vadd.f32 %v1229_v19, %v1076_v22  ;;  %3589 = vmatmul.mubr.msk.f32.vlgmr.msra.gmra.mrb[10].mxu1 %vm1032_vm2, %v1076_v22 }
 0x390   : > { %3634 = vmatprep.mubr.msk.f32.mxu1 %vm4140_vm1, %v4138_v7  ;;  %3812 = vmatpush3.bf16.msra.mxu0 %v3811_v29 }
 0x391   : > { %3813 = vmatprep.subr.bf16.mxu0 %v4139_v12  ;;  %3833 = vmatpush3.bf16.msra.mxu1 %v3832_v13 }
 0x392   : > { %3834 = vmatprep.subr.bf16.mxu1 %v4139_v12 }
 0x394   : > { %3815 = vmatpush3.bf16.msra.mxu0 %v3814_v32  ;;  %v3841_v32 = vpack.c.bf16 %v1612_v31, %v1611_v30 }
 0x395   : > { %3816 = vmatprep.subr.bf16.mxu0 %v4139_v12 }
 0x398   : > { %3818 = vmatpush3.bf16.msra.mxu0 %v3817_v35  ;;  %v3844_v35 = vpack.c.bf16 %v1614_v34, %v1613_v33 }
 0x399   : > { %3819 = vmatprep.subr.bf16.mxu0 %v4139_v12 }
 0x39c   : > { %3821 = vmatpush3.bf16.msra.mxu0 %v3820_v40 }
 0x39d   : > { %3822 = vmatprep.subr.bf16.mxu0 %v4139_v12 }
 0x3a0   : > { %3824 = vmatpush3.bf16.msra.mxu0 %v3823_v43 }
 0x3a1   : > { %3825 = vmatprep.subr.bf16.mxu0 %v4139_v12 }
 0x3a4   : > { %3827 = vmatpush3.bf16.msra.mxu0 %v3826_v46 }
 0x3a5   : > { %3828 = vmatprep.subr.bf16.mxu0 %v4139_v12 }
 0x3a8   : > { %3830 = vmatpush3.bf16.msra.mxu0 %v3829_v49 }
 0x3a9   : > { %3857 = vmatprep.subr.bf16.mxu0 %v4139_v12 }
 0x3f1   : > { %v1147_v38 = vpop.f32.mrb[4].mxu0 }
 0x3f2   : > { %v3575_v39 = vpop.f32.mrb[5].mxu0 }
 0x3f3   : > { %v3341_v39 = vld [vmem:[%s4951_s7] ss:$0 sm:$0xff] }
 0x45a   : > { %v1225_v50 = vpop.f32.mrb[8].mxu1 }
 0x45b   : > { %1384 = vrot.lane.b32.xlu1 %v1225_v50, %s4972_s0  ;;  %v3580_v51 = vpop.f32.mrb[9].mxu1  ;;  %s4655_s0 = scalar_lea.vmem [#allocation6], %s3322_s21  ;;  %s4976_s21 = sshll.u32 %s4258_s28, 4 }
 0x45c   : > { %s4843_s19 = scalar_lea.hbm %s4960_s16, %s4976_s21 }
 0x45e   : > { %v1302_v52 = vpop.f32.mrb[6].mxu0 }
 0x45f   : > { %1388 = vrot.lane.b32.xlu0 %v1302_v52, %s4975_s15  ;;  %v3585_v53 = vpop.f32.mrb[7].mxu0 }
 0x462   : > { %v1379_v54 = vpop.f32.mrb[10].mxu1 }
 0x463   : > { %1392 = vrot.lane.b32.xlu1 %v1379_v54, %s4974_s27  ;;  %v3590_v55 = vpop.f32.mrb[11].mxu1 }
 0x464   : > { %v3348_v55 = vld [vmem:[%s4990_s23 + $0x68] sm:$0xff] }
 0x4cd   : > { %v1385_v56 = vpop.permute.xlu1 %1384 }
 0x4ce   : > { %v1395_v58 = vsel %vm573_vm0, %v1147_v38, %v1385_v56  ;;  %v3847_v38 = vpack.c.bf16 %v1616_v37, %v1615_v36  ;;  %v3351_v56 = vld [vmem:[%s4990_s23 + $0x80] sm:$0xff] }
 0x4d1   : > { %v1389_v57 = vpop.permute.xlu0 %1388 }
 0x4d2   : > { %v1397_v59 = vsel %vm1396_vm3, %v1395_v58, %v1389_v57  ;;  %v3849_v57 = vpack.c.bf16 %v3351_v56, %v3348_v55  ;;  %v3347_v58 = vld [vmem:[%s4990_s23 + $0x60] sm:$0xff] }
 0x4d5   : > { %v1393_v60 = vpop.permute.xlu1 %1392 }
 0x4d6   : > { %v1399_v61 = vsel %vm1398_vm4, %v1397_v59, %v1393_v60  ;;  %v3350_v59 = vld [vmem:[%s4990_s23 + $0x78] sm:$0xff]  ;;  %v3349_v60 = vld [vmem:[%s4990_s23 + $0x70] sm:$0xff] }
 0x4d7   : > { %3624 = vmatmul.mubr.f32.vlgmr.msra.gmra.mrb[8].mxu0 %v1399_v61  ;;  %v3851_v61 = vpack.c.bf16 %v3350_v59, %v3347_v58 }
 0x4d8   : > { %3664 = vmatprep.mubr.msk.f32.mxu0 %vm4140_vm1, %v4138_v7 }
 0x5aa   : > { %v1489_v63 = vpop.f32.mrb[8].mxu0 }
 0x5ab   : > { %v1490_v0 = vadd.f32 %v3338_v62, %v1489_v63  ;;  %v3625_v1 = vpop.f32.mrb[9].mxu0  ;;  %v3352_v62 = vld [vmem:[%s4990_s23 + $0x88] sm:$0xff] }
 0x5ac   : > { %v3858_v63 = vpack.c.bf16 %v3352_v62, %v3349_v60  ;;  %v3357_v1 = vld [vmem:[%s4990_s23 + $0xb0] sm:$0xff] }
 0x5ad   : > { %v1493_v2 = vadd.f32 %v1490_v0, %v4331_v20  ;;  %v1526_v20 = vld [vmem:[%s4950_s6 + $0x10] sm:$0xff]  ;;  %v3354_v0 = vld [vmem:[%s4990_s23 + $0x98] sm:$0xff] }
 0x5ae   : > { %v3835_v15 = vpack.c.bf16 %v1527_v14, %v1526_v20  ;;  %3859 = vmatpush3.bf16.msra.mxu0 %v3858_v63  ;;  %v3345_v14 = vld [vmem:[%s4954_s10] ss:$0 sm:$0xff] }
 0x5af   : > { %v1496_v3 = vsel %vm573_vm0, %v1493_v2, 0.0  ;;  %3860 = vmatprep.subr.bf16.mxu0 %v4139_v12 }
 0x5b0   : > { %1497 = vadd.xlane.f32.xlu0 %v1496_v3  ;;  %3836 = vmatpush3.bf16.msra.mxu1 %v3835_v15  ;;  %v3853_v3 = vpack.c.bf16 %v3357_v1, %v3354_v0 }
 0x5b1   : > { %3837 = vmatprep.subr.bf16.mxu1 %v4139_v12 }
 0x63d   : > { %v1498_v4 = vpop.xlane.xlu0 %1497 }
 0x63e   : > { %v1500_v5 = vmul.f32 0.03125, %v1498_v4  ;;  %v3356_v4 = vld [vmem:[%s4990_s23 + $0xa8] sm:$0xff] }
 0x640   : > { %v1501_v6 = vsub.f32 %v1493_v2, %v1500_v5  ;;  %v3353_v2 = vld [vmem:[%s4990_s23 + $0x90] sm:$0xff]  ;;  %v3355_v5 = vld [vmem:[%s4990_s23 + $0xa0] sm:$0xff] }
 0x642   : > { %v1502_v8 = vmul.f32 %v1501_v6, %v1501_v6 }
 0x644   : > { %v1503_v9 = vsel %vm573_vm0, %v1502_v8, 0.0  ;;  %v3855_v8 = vpack.c.bf16 %v3356_v4, %v3353_v2 }
 0x645   : > { %1504 = vadd.xlane.f32.xlu1 %v1503_v9 }
 0x6d2   : > { %v1505_v16 = vpop.xlane.xlu1 %1504 }
 0x6d3   : > { %v1506_v17 = vmul.f32 0.03125, %v1505_v16  ;;  %v3346_v16 = vld [vmem:[%s4955_s11] ss:$0 sm:$0xff] }
 0x6d5   : > { %v1507_v18 = vadd.f32 1e-05, %v1506_v17 }
 0x6d7   : > { %3982 = vrsqrt.f32 %v1507_v18 }
 0x6e1   : > { %v3983_v19 = vpop.eup %3982 }
 0x6e2   : > { %v1509_v22 = vmul.f32 %v3983_v19, %v1501_v6  ;;  %v3358_v6 = vld [vmem:[%s4990_s23 + $0xb8] sm:$0xff] }
 0x6e3   : > { %v3861_v9 = vpack.c.bf16 %v3358_v6, %v3355_v5 }
 0x6e4   : > { %v1516_v27 = vmul.f32 %v3339_v21, %v1509_v22 }
 0x6e5   : > { %3862 = vmatpush3.bf16.msra.mxu0 %v3861_v9 }
 0x6e6   : > { %v1523_v29 = vadd.f32 %v3340_v26, %v1516_v27  ;;  %3677 = vmatprep.subr.mxu0 %v4138_v7 }
 0x6e8   : > { %3635 = vmatmul.mubr.msk.f32.vlgmr.msra.gmra.mrb[12].mxu1 %vm573_vm0, %v1523_v29 }
 0x6e9   : > { %3839 = vmatpush3.bf16.msra.mxu1 %v3838_v28  ;;  %3653 = vmatprep.mubr.msk.f32.mxu1 %vm4140_vm1, %v4138_v7 }
 0x6ea   : > { %3840 = vmatprep.subr.bf16.mxu1 %v4139_v12 }
 0x6ed   : > { %3842 = vmatpush3.bf16.msra.mxu1 %v3841_v32 }
 0x6ee   : > { %3843 = vmatprep.subr.bf16.mxu1 %v4139_v12 }
 0x6f1   : > { %3845 = vmatpush3.bf16.msra.mxu1 %v3844_v35 }
 0x6f2   : > { %3846 = vmatprep.subr.bf16.mxu1 %v4139_v12 }
 0x6f5   : > { %3848 = vmatpush3.bf16.msra.mxu1 %v3847_v38 }
 0x6f6   : > { %3850 = vmatprep.subr.bf16.mxu1 %v3849_v57 }
 0x7bb   : > { %v1604_v40 = vpop.f32.mrb[12].mxu1 }
 0x7bc   : > { %v1605_v41 = vadd.f32 %v3341_v39, %v1604_v40  ;;  %v3636_v42 = vpop.f32.mrb[13].mxu1 }
 0x7be   : > { %v1608_v43 = vmax.f32 %v1605_v41, 0.0 }
 0x7c0   : > { %3654 = vmatmul.mubr.msk.f32.vlgmr.msra.gmra.mrb[14].mxu1 %vm1396_vm3, %v1608_v43 }
 0x7c1   : > { %1807 = vmatprep.mubr.f32.mxu1 %v4138_v7  ;;  %3852 = vmatpush1.bf16.msra.mxu1 %v3851_v61 }
 0x7c2   : > { %3854 = vmatprep.subr.bf16.mxu1 %v3853_v3 }
 0x7c5   : > { %3856 = vmatpush1.bf16.msra.mxu1 %v3855_v8 }
 0x7c6   : > { %3667 = vmatprep.subr.mxu1 %v4138_v7 }
 0x893   : > { %v1693_v45 = vpop.f32.mrb[14].mxu1 }
 0x894   : > { %v1694_v46 = vadd.f32 %v3343_v44, %v1693_v45  ;;  %v3655_v47 = vpop.f32.mrb[15].mxu1 }
 0x896   : > { %v1697_v48 = vadd.f32 %v1694_v46, %v1523_v29 }
 0x898   : > { %v1700_v49 = vsel %vm573_vm0, %v1697_v48, 0.0 }
 0x899   : > { %1701 = vadd.xlane.f32.xlu0 %v1700_v49 }
 0x926   : > { %v1702_v50 = vpop.xlane.xlu0 %1701 }
 0x927   : > { %v1703_v51 = vmul.f32 0.03125, %v1702_v50 }
 0x929   : > { %v1704_v52 = vsub.f32 %v1697_v48, %v1703_v51 }
 0x92b   : > { %v1705_v53 = vmul.f32 %v1704_v52, %v1704_v52 }
 0x92d   : > { %v1706_v54 = vsel %vm573_vm0, %v1705_v53, 0.0 }
 0x92e   : > { %1707 = vadd.xlane.f32.xlu0 %v1706_v54 }
 0x9bb   : > { %v1708_v10 = vpop.xlane.xlu0 %1707 }
 0x9bc   : > { %v1709_v11 = vmul.f32 0.03125, %v1708_v10 }
 0x9be   : > { %v1710_v13 = vadd.f32 1e-05, %v1709_v11 }
 0x9c0   : > { %3984 = vrsqrt.f32 %v1710_v13 }
 0x9ca   : > { %v3985_v20 = vpop.eup %3984 }
 0x9cb   : > { %v1712_v15 = vmul.f32 %v3985_v20, %v1704_v52 }
 0x9cd   : > { %v1719_v17 = vmul.f32 %v3345_v14, %v1712_v15 }
 0x9cf   : > { %v4581_v18 = vadd.f32 %v3346_v16, %v1719_v17 }
 0x9d1   : > { %3359 = vmatmul.mubr.msk.f32.vlgmr.msra.gmra.mrb[16].mxu1 %vm573_vm0, %v4581_v18  ;;  %3665 = vmatmul.mubr.msk.f32.vlgmr.msra.gmra.mrb[10].mxu0 %vm573_vm0, %v4581_v18 }
 0x9d2   : > { %3669 = vmatprep.mubr.msk.f32.mxu1 %vm4140_vm1, %v4138_v7  ;;  %3679 = vmatprep.mubr.msk.f32.mxu0 %vm4140_vm1, %v4138_v7 }
 0xaa4   : > { %v1809_v19 = vpop.f32.mrb[16].mxu1  ;;  %v4591_v21 = vpop.f32.mrb[10].mxu0 }
 0xaa5   : > { %v3666_v22 = vpop.f32.mrb[11].mxu0  ;;  %1960 = vrot.lane.b32.xlu0 %v1809_v19, %s4974_s27  ;;  %v1811_v24 = vpop.f32.mrb[17].mxu1 }
 0xaa6   : > { %1962 = vrot.lane.b32.xlu1 %v1811_v24, %s4974_s27  ;;  %3668 = vmatpush3.xpose.msk.msra.mxu1 %vm573_vm0, %v1811_v24 }
 0xaa7   : > { %3672 = vmatprep.subr.mxu1 %v4138_v7 }
 0xaa9   : > { %2038 = vrot.lane.b32.xlu0 %v1809_v19, %s4975_s15  ;;  %3670 = vmatmul.mubr.msk.f32.vlgmr.msra.gmra.mrb[18].mxu1 %vm573_vm0, %v1809_v19 }
 0xaaa   : > { %2040 = vrot.lane.b32.xlu1 %v1811_v24, %s4975_s15  ;;  %3674 = vmatprep.mubr.msk.f32.mxu1 %vm4140_vm1, %v4138_v7 }
 0xaae   : > { %2118 = vrot.lane.b32.xlu1 %v1811_v24, %s4994_s20 }
 0xab2   : > { %2116 = vrot.lane.b32.xlu1 %v1809_v19, %s4994_s20 }
 0xb17   : > { %v1961_v26 = vpop.permute.xlu0 %1960 }
 0xb18   : > { %v1963_v25 = vpop.permute.xlu1 %1962 }
 0xb19   : > { %3673 = vmatpush3.xpose.msk.msra.mxu1 %vm573_vm0, %v1963_v25 }
 0xb1a   : > { %3682 = vmatprep.subr.mxu1 %v4138_v7 }
 0xb1b   : > { %v2039_v28 = vpop.permute.xlu0 %2038 }
 0xb1c   : > { %v2041_v27 = vpop.permute.xlu1 %2040  ;;  %3675 = vmatmul.mubr.msk.f32.vlgmr.msra.gmra.mrb[20].mxu1 %vm573_vm0, %v1961_v26  ;;  %v3373_v26 = vld [vmem:[%s4992_s2 + $0x80] sm:$0xff] }
 0xb1d   : > { %3678 = vmatpush3.xpose.msk.msra.mxu0 %vm573_vm0, %v2041_v27  ;;  %3684 = vmatprep.mubr.msk.f32.mxu1 %vm4140_vm1, %v4138_v7  ;;  %v3374_v27 = vld [vmem:[%s4992_s2 + $0x88] sm:$0xff] }
 0xb1e   : > { %3687 = vmatprep.subr.mxu0 %v4138_v7 }
 0xb20   : > { %3680 = vmatmul.mubr.msk.f32.vlgmr.msra.gmra.mrb[12].mxu0 %vm573_vm0, %v2039_v28  ;;  %v2119_v29 = vpop.permute.xlu1 %2118  ;;  %v3375_v28 = vld [vmem:[%s4992_s2 + $0x90] sm:$0xff] }
 0xb21   : > { %3683 = vmatpush3.xpose.msk.msra.mxu1 %vm573_vm0, %v2119_v29  ;;  %3688 = vmatpush3.msra.mxu0 %v4591_v21  ;;  %v3864_v29 = vpack.c.bf16 %v3374_v27, %v3373_v26  ;;  %v3403_v26 = vld [vmem:[%s4952_s8 + $0x48] sm:$0xff]  ;;  %v3394_v27 = vld [vmem:[%s4949_s5 + $0x1] ss:$0 sm:$0xff] }
 0xb22   : > { %3692 = vmatprep.subr.mxu1 %v4138_v7  ;;  %3689 = vmatprep.mubr.msk.f32.mxu0 %vm4140_vm1, %v4138_v7 }
 0xb23   : > { %3697 = vmatprep.subr.mxu0 %v4138_v7 }
 0xb24   : > { %v2117_v30 = vpop.permute.xlu1 %2116 }
 0xb25   : > { %3685 = vmatmul.mubr.msk.f32.vlgmr.msra.gmra.mrb[22].mxu1 %vm573_vm0, %v2117_v30  ;;  %v3376_v30 = vld [vmem:[%s4992_s2 + $0x98] sm:$0xff] }
 0xb26   : > { %3694 = vmatprep.mubr.msk.f32.mxu1 %vm4140_vm1, %v4138_v7 }
 0xb7c   : > { %v1956_v31 = vpop.f32.mrb[18].mxu1 }
 0xb7d   : > { %v2194_v32 = vmul.f32 0.17677669, %v1956_v31  ;;  %v3671_v33 = vpop.f32.mrb[19].mxu1  ;;  %v3867_v31 = vpack.c.bf16 %v3376_v30, %v3375_v28 }
 0xb7e   : > { %v3378_v33 = vld [vmem:[%s4992_s2 + $0xa8] sm:$0xff] }
 0xb7f   : > { %v2198_v34 = vsel %vm1032_vm2, %v2194_v32, -inf }
 0xb80   : > { %2199 = vmax.xlane.f32.xlu0 %v2198_v34 }
 0xbef   : > { %v2034_v35 = vpop.f32.mrb[20].mxu1 }
 0xbf0   : > { %v2195_v36 = vmul.f32 0.17677669, %v2034_v35  ;;  %v3676_v37 = vpop.f32.mrb[21].mxu1  ;;  %v3379_v35 = vld [vmem:[%s4992_s2 + $0xb0] sm:$0xff] }
 0xbf2   : > { %v2201_v38 = vsel %vm1032_vm2, %v2195_v36, -inf }
 0xbf3   : > { %v2112_v39 = vpop.f32.mrb[12].mxu0  ;;  %2202 = vmax.xlane.f32.xlu1 %v2201_v38  ;;  %v3381_v38 = vld [vmem:[%s4992_s2 + $0xc0] sm:$0xff] }
 0xbf4   : > { %v2196_v40 = vmul.f32 0.17677669, %v2112_v39  ;;  %v3681_v41 = vpop.f32.mrb[13].mxu0  ;;  %v3382_v39 = vld [vmem:[%s4992_s2 + $0xc8] sm:$0xff] }
 0xbf6   : > { %v2204_v42 = vsel %vm1032_vm2, %v2196_v40, -inf }
 0xbf7   : > { %2205 = vmax.xlane.f32.xlu0 %v2204_v42  ;;  %v3876_v42 = vpack.c.bf16 %v3382_v39, %v3381_v38  ;;  %v3409_v38 = vld [vmem:[%s4952_s8 + $0x78] sm:$0xff] }
 0xbf8   : > { %v2190_v43 = vpop.f32.mrb[22].mxu1 }
 0xbf9   : > { %v2197_v44 = vmul.f32 0.17677669, %v2190_v43  ;;  %v3686_v45 = vpop.f32.mrb[23].mxu1  ;;  %v3383_v43 = vld [vmem:[%s4992_s2 + $0xd0] sm:$0xff] }
 0xbfb   : > { %v2207_v46 = vsel %vm1032_vm2, %v2197_v44, -inf }
 0xbfc   : > { %2208 = vmax.xlane.f32.xlu0 %v2207_v46  ;;  %v3385_v46 = vld [vmem:[%s4992_s2 + $0xe0] sm:$0xff] }
 0xc04   : > { %2318 = vrot.lane.b32.xlu1 %v4591_v21, %s4974_s27  ;;  %s4996_s27 = smov 96  }
 0xc0d   : > { %v2200_v47 = vpop.xlane.xlu0 %2199 }
 0xc0e   : > { %v2210_v48 = vsub.f32 %v2194_v32, %v2200_v47  ;;  %v3377_v32 = vld [vmem:[%s4992_s2 + $0xa0] sm:$0xff]  ;;  %v3386_v47 = vld [vmem:[%s4992_s2 + $0xe8] sm:$0xff] }
 0xc0f   : > { %v3870_v34 = vpack.c.bf16 %v3378_v33, %v3377_v32  ;;  %v3405_v32 = vld [vmem:[%s4952_s8 + $0x58] sm:$0xff] }
 0xc10   : > { %v2214_v49 = vmul.f32 1.442695, %v2210_v48  ;;  %v3882_v48 = vpack.c.bf16 %v3386_v47, %v3385_v46 }
 0xc12   : > { %3986 = vpow2.f32 %v2214_v49  ;;  %v3387_v49 = vld [vmem:[%s4992_s2 + $0xf0] sm:$0xff] }
 0xc1c   : > { %v3987_v50 = vpop.eup %3986 }
 0xc1d   : > { %v2222_v51 = vsel %vm1032_vm2, %v3987_v50, 0.0 }
 0xc28   : > { %2223 = vadd.xlane.f32.xlu1 %v2222_v51 }
 0xc80   : > { %v2203_v52 = vpop.xlane.xlu1 %2202 }
 0xc81   : > { %v2211_v53 = vsub.f32 %v2195_v36, %v2203_v52  ;;  %v3380_v36 = vld [vmem:[%s4992_s2 + $0xb8] sm:$0xff] }
 0xc82   : > { %v3873_v37 = vpack.c.bf16 %v3380_v36, %v3379_v35  ;;  %v3407_v35 = vld [vmem:[%s4952_s8 + $0x68] sm:$0xff] }
 0xc83   : > { %v2216_v54 = vmul.f32 1.442695, %v2211_v53 }
 0xc84   : > { %v2206_v55 = vpop.xlane.xlu0 %2205  ;;  %v2319_v56 = vpop.permute.xlu1 %2318 }
 0xc85   : > { %3988 = vpow2.f32 %v2216_v54  ;;  %v2212_v57 = vsub.f32 %v2196_v40, %v2206_v55  ;;  %3693 = vmatpush3.msra.mxu1 %v2319_v56 }
 0xc86   : > { %3702 = vmatprep.subr.mxu1 %v4138_v7 }
 0xc87   : > { %v2218_v58 = vmul.f32 1.442695, %v2212_v57 }
 0xc89   : > { %3990 = vpow2.f32 %v2218_v58  ;;  %v2209_v59 = vpop.xlane.xlu0 %2208 }
 0xc8a   : > { %v2213_v60 = vsub.f32 %v2197_v44, %v2209_v59  ;;  %v3384_v44 = vld [vmem:[%s4992_s2 + $0xd8] sm:$0xff] }
 0xc8b   : > { %v3879_v45 = vpack.c.bf16 %v3384_v44, %v3383_v43 }
 0xc8c   : > { %v2220_v61 = vmul.f32 1.442695, %v2213_v60 }
 0xc8e   : > { %3992 = vpow2.f32 %v2220_v61 }
 0xc8f   : > { %v3989_v62 = vpop.eup %3988 }
 0xc90   : > { %v2225_v63 = vsel %vm1032_vm2, %v3989_v62, 0.0 }
 0xc91   : > { %2226 = vadd.xlane.f32.xlu0 %v2225_v63 }
 0xc93   : > { %v3991_v0 = vpop.eup %3990 }
 0xc94   : > { %v2228_v1 = vsel %vm1032_vm2, %v3991_v0, 0.0 }
 0xc95   : > { %2229 = vadd.xlane.f32.xlu1 %v2228_v1 }
 0xc98   : > { %v3993_v2 = vpop.eup %3992 }
 0xc99   : > { %v2231_v3 = vsel %vm1032_vm2, %v3993_v2, 0.0 }
 0xc9a   : > { %2232 = vadd.xlane.f32.xlu0 %v2231_v3 }
 0xca6   : > { %2472 = vrot.lane.b32.xlu1 %v4591_v21, %s4994_s20 }
 0xcb0   : > { %2395 = vrot.lane.b32.xlu0 %v4591_v21, %s4975_s15  ;;  %s4995_s15 = smov 64  }
 0xcb5   : > { %v2224_v4 = vpop.xlane.xlu1 %2223 }
 0xcb6   : > { %3994 = vrcp.f32 %v2224_v4 }
 0xcc0   : > { %v3995_v5 = vpop.eup %3994 }
 0xcc1   : > { %v2238_v6 = vmul.f32 %v3995_v5, %v3987_v50  ;;  %v3388_v50 = vld [vmem:[%s4992_s2 + $0xf8] sm:$0xff] }
 0xcc2   : > { %v3885_v51 = vpack.c.bf16 %v3388_v50, %v3387_v49 }
 0xcc3   : > { %v2242_v8 = vadd.f32 %v2238_v6, %v4401_v23  ;;  %3690 = vmatmul.mubr.msk.f32.vlgmr.msra.gmra.mrb[14].mxu0 %vm1032_vm2, %v2238_v6 }
 0xcc4   : > { %3699 = vmatprep.mubr.msk.f32.mxu0 %vm4140_vm1, %v4138_v7 }
 0xd1e   : > { %v2227_v9 = vpop.xlane.xlu0 %2226 }
 0xd1f   : > { %3996 = vrcp.f32 %v2227_v9 }
 0xd22   : > { %v2230_v10 = vpop.xlane.xlu1 %2229 }
 0xd23   : > { %3998 = vrcp.f32 %v2230_v10 }
 0xd26   : > { %v2473_v15 = vpop.permute.xlu1 %2472 }
 0xd27   : > { %v2233_v11 = vpop.xlane.xlu0 %2232 }
 0xd28   : > { %4000 = vrcp.f32 %v2233_v11 }
 0xd29   : > { %v3997_v13 = vpop.eup %3996 }
 0xd2a   : > { %v2239_v20 = vmul.f32 %v3997_v13, %v3989_v62  ;;  %v3395_v13 = vld [vmem:[%s4950_s6 + $0x20] sm:$0xff] }
 0xd2b   : > { %v2396_v14 = vpop.permute.xlu0 %2395 }
 0xd2c   : > { %3695 = vmatmul.mubr.msk.f32.vlgmr.msra.gmra.mrb[24].mxu1 %vm1032_vm2, %v2239_v20  ;;  %3698 = vmatpush3.msra.mxu0 %v2396_v14  ;;  %v2316_v17 = vadd.f32 %v2242_v8, %v2239_v20  ;;  %v3396_v20 = vld [vmem:[%s4950_s6 + $0x28] sm:$0xff] }
 0xd2d   : > { %v3999_v23 = vpop.eup %3998  ;;  %3703 = vmatpush3.msra.mxu1 %v2473_v15  ;;  %3704 = vmatprep.mubr.msk.f32.mxu1 %vm4140_vm1, %v4138_v7  ;;  %v3888_v14 = vpack.c.bf16 %v3396_v20, %v3395_v13  ;;  %v3398_v15 = vld [vmem:[%s4950_s6 + $0x38] sm:$0xff]  ;;  %v3066_v13 = vld [vmem:[%s4957_s13 + $0x8] sm:$0xff]  ;;  %v3067_v20 = vld [vmem:[%s4957_s13 + $0x10] sm:$0xff] }
 0xd2e   : > { %v2240_v16 = vmul.f32 %v3999_v23, %v3991_v0  ;;  %3863 = vmatprep.subr.bf16.mxu0 %v4139_v12  ;;  %3887 = vmatprep.subr.bf16.mxu1 %v4139_v12  ;;  %v3390_v0 = vld [vmem:[%s4993_s3 + $0x1] ss:$0 sm:$0xff] }
 0xd30   : > { %3700 = vmatmul.mubr.msk.f32.vlgmr.msra.gmra.mrb[16].mxu0 %vm1032_vm2, %v2240_v16  ;;  %v2394_v22 = vadd.f32 %v2316_v17, %v2240_v16 }
 0xd31   : > { %3739 = vmatprep.mubr.msk.f32.mxu0 %vm4140_vm1, %v4138_v7  ;;  %3865 = vmatpush3.bf16.msra.mxu0 %v3864_v29 }
 0xd32   : > { %v4001_v19 = vpop.eup %4000  ;;  %3866 = vmatprep.subr.bf16.mxu0 %v4139_v12 }
 0xd33   : > { %v2241_v21 = vmul.f32 %v4001_v19, %v3993_v2 }
 0xd35   : > { %3705 = vmatmul.mubr.msk.f32.vlgmr.msra.gmra.mrb[26].mxu1 %vm1032_vm2, %v2241_v21  ;;  %v2471_v24 = vadd.f32 %v2394_v22, %v2241_v21  ;;  %3868 = vmatpush3.bf16.msra.mxu0 %v3867_v31  ;;  %v3393_v22 = vld [vmem:[%s4948_s4 + $0x1] ss:$0 sm:$0xff]  ;;  %v3404_v31 = vld [vmem:[%s4952_s8 + $0x50] sm:$0xff] }
 0xd36   : > { %3750 = vmatprep.mubr.msk.f32.mxu1 %vm4140_vm1, %v4138_v7  ;;  %3869 = vmatprep.subr.bf16.mxu0 %v4139_v12  ;;  %v3897_v33 = vpack.c.bf16 %v3405_v32, %v3404_v31 }
 0xd37   : > { %v2899_v25 = vmul.f32 0.125, %v2471_v24  ;;  %3889 = vmatpush3.bf16.msra.mxu1 %v3888_v14 }
 0xd38   : > { %3890 = vmatprep.subr.bf16.mxu1 %v4139_v12 }
 0xd39   : > { %2900 = vst.msk [vmem:[%s4655_s0] sm:$0xff] %vm1032_vm2, %v2899_v25  ;;  %3871 = vmatpush3.bf16.msra.mxu0 %v3870_v34  ;;  %v3402_v25 = vld [vmem:[%s4952_s8 + $0x40] sm:$0xff] }
 0xd3a   : > { %3872 = vmatprep.subr.bf16.mxu0 %v4139_v12  ;;  %v3894_v29 = vpack.c.bf16 %v3403_v26, %v3402_v25  ;;  %v3406_v34 = vld [vmem:[%s4952_s8 + $0x60] sm:$0xff] }
 0xd3b   : > { %v3900_v36 = vpack.c.bf16 %v3407_v35, %v3406_v34 }
 0xd3d   : > { %3874 = vmatpush3.bf16.msra.mxu0 %v3873_v37  ;;  %v3408_v37 = vld [vmem:[%s4952_s8 + $0x70] sm:$0xff] }
 0xd3e   : > { %3875 = vmatprep.subr.bf16.mxu0 %v4139_v12  ;;  %v3903_v39 = vpack.c.bf16 %v3409_v38, %v3408_v37 }
 0xd41   : > { %3877 = vmatpush3.bf16.msra.mxu0 %v3876_v42 }
 0xd42   : > { %3878 = vmatprep.subr.bf16.mxu0 %v4139_v12 }
 0xd45   : > { %3880 = vmatpush3.bf16.msra.mxu0 %v3879_v45  ;;  %v3411_v45 = vld [vmem:[%s4953_s9 + $0x1] ss:$0 sm:$0xff] }
 0xd46   : > { %3881 = vmatprep.subr.bf16.mxu0 %v4139_v12 }
 0xd49   : > { %3883 = vmatpush3.bf16.msra.mxu0 %v3882_v48 }
 0xd4a   : > { %3884 = vmatprep.subr.bf16.mxu0 %v4139_v12 }
 0xd4d   : > { %3886 = vmatpush3.bf16.msra.mxu0 %v3885_v51 }
 0xd4e   : > { %3905 = vmatprep.subr.bf16.mxu0 %v4139_v12 }
 0xd96   : > { %v2312_v40 = vpop.f32.mrb[14].mxu0 }
 0xd97   : > { %v3691_v41 = vpop.f32.mrb[15].mxu0 }
 0xdff   : > { %v2390_v52 = vpop.f32.mrb[24].mxu1 }
 0xe00   : > { %2549 = vrot.lane.b32.xlu1 %v2390_v52, %s4994_s20  ;;  %v3696_v53 = vpop.f32.mrb[25].mxu1  ;;  %s4144_s20 = smov [#allocation4]  }
 0xe01   : > { %s4018_s2 = sshll.u32 %s4144_s20, 4  ;;  %s4019_s2 = int_to_ptr.vmem [resolvable:$false] %s4018_s2 }
 0xe02   : > { %s4020_s3 = scalar_lea.vmem %s4019_s2, 32 }
 0xe03   : > { %v2467_v54 = vpop.f32.mrb[16].mxu0 }
 0xe04   : > { %2553 = vrot.lane.b32.xlu0 %v2467_v54, %s4995_s15  ;;  %v3701_v55 = vpop.f32.mrb[17].mxu0  ;;  %s548_s15 = scalar_lea.vmem [#allocation4], %s4647_s18 }
 0xe05   : > { %s3193_s30 = sshll.u32 %s548_s15, 4  ;;  %s3194_s30 = int_to_ptr.vmem [resolvable:$true] %s3193_s30 }
 0xe06   : > { %p4021_p0 = scmp.lt.s32.totalorder %s3194_s30, %s4019_s2 }
 0xe08   : > { %v2544_v56 = vpop.f32.mrb[26].mxu1 }
 0xe09   : > { %2557 = vrot.lane.b32.xlu1 %v2544_v56, %s4996_s27  ;;  %v3706_v57 = vpop.f32.mrb[27].mxu1  ;;  %s4014_s27 = scalar_lea.vmem %s3194_s30, 16 }
 0xe0a   : > { %p4015_p11 = scmp.ne.s32.totalorder %s3194_s30, %s4014_s27  ;;  %p4022_p1 = scmp.lt.s32.totalorder %s4020_s3, %s4014_s27 }
 0xe0c   : > { %p4016_p12 = pnand %p4015_p11, %p4277_p5  ;;  %p4023_p2 = por %p4022_p1, %p4021_p0 }
 0xe0e   : > { %p4017_p13 = pneg %p4016_p12 }
 0xe10   : > { %p4024_p3 = pnand %p4023_p2, %p4017_p13 }
 0xe72   : > { %v2550_v58 = vpop.permute.xlu1 %2549 }
 0xe73   : > { %v2560_v60 = vsel %vm573_vm0, %v2312_v40, %v2550_v58  ;;  %v3400_v40 = vld [vmem:[%s4951_s7 + $0x1] ss:$0 sm:$0xff] }
 0xe76   : > { %v2554_v59 = vpop.permute.xlu0 %2553 }
 0xe77   : > { %v2561_v61 = vsel %vm1396_vm3, %v2560_v60, %v2554_v59  ;;  %v3415_v60 = vld [vmem:[%s4954_s10 + $0x1] ss:$0 sm:$0xff] }
 0xe7b   : > { %v2558_v62 = vpop.permute.xlu1 %2557 }
 0xe7c   : > { %v2562_v63 = vsel %vm1398_vm4, %v2561_v61, %v2558_v62  ;;  %v3416_v62 = vld [vmem:[%s4955_s11 + $0x1] ss:$0 sm:$0xff] }
 0xe7d   : > { %3740 = vmatmul.mubr.f32.vlgmr.msra.gmra.mrb[18].mxu0 %v2562_v63 }
 0xe7e   : > { %3790 = vmatprep.mubr.msk.f32.mxu0 %vm4140_vm1, %v4138_v7 }
 0xf50   : > { %v2654_v1 = vpop.f32.mrb[18].mxu0 }
 0xf51   : > { %v2655_v2 = vadd.f32 %v3390_v0, %v2654_v1  ;;  %v3741_v3 = vpop.f32.mrb[19].mxu0  ;;  %v2901_v1 = vld [vmem:[%s4956_s12] sm:$0x1] }
 0xf53   : > { %v2658_v4 = vadd.f32 %v2655_v2, %v4581_v18  ;;  %v3397_v18 = vld [vmem:[%s4950_s6 + $0x30] sm:$0xff] }
 0xf54   : > { %v3891_v23 = vpack.c.bf16 %v3398_v15, %v3397_v18  ;;  %v3068_v18 = vld [vmem:[%s4957_s13 + $0x18] sm:$0xff] }
 0xf55   : > { %v2663_v5 = vsel %vm573_vm0, %v2658_v4, 0.0  ;;  %v3909_v15 = vpack.c.bf16 %v3068_v18, %v3067_v20 }
 0xf56   : > { %2664 = vadd.xlane.f32.xlu0 %v2663_v5  ;;  %3892 = vmatpush3.bf16.msra.mxu1 %v3891_v23 }
 0xf57   : > { %3893 = vmatprep.subr.bf16.mxu1 %v4139_v12 }
 0xfe3   : > { %v2665_v6 = vpop.xlane.xlu0 %2664 }
 0xfe4   : > { %v2666_v8 = vmul.f32 0.03125, %v2665_v6 }
 0xfe6   : > { %v2667_v9 = vsub.f32 %v2658_v4, %v2666_v8 }
 0xfe8   : > { %v2668_v10 = vmul.f32 %v2667_v9, %v2667_v9 }
 0xfea   : > { %v2669_v11 = vsel %vm573_vm0, %v2668_v10, 0.0 }
 0xfeb   : > { %2670 = vadd.xlane.f32.xlu1 %v2669_v11 }
0x1078   : > { %v2671_v16 = vpop.xlane.xlu1 %2670 }
0x1079   : > { %v2672_v17 = vmul.f32 0.03125, %v2671_v16 }
0x107b   : > { %v2673_v19 = vadd.f32 1e-05, %v2672_v17 }
0x107d   : > { %4002 = vrsqrt.f32 %v2673_v19 }
0x1087   : > { %v4003_v21 = vpop.eup %4002 }
0x1088   : > { %v2675_v24 = vmul.f32 %v4003_v21, %v2667_v9 }
0x108a   : > { %v2682_v28 = vmul.f32 %v3393_v22, %v2675_v24 }
0x108c   : > { %v2689_v30 = vadd.f32 %v3394_v27, %v2682_v28 }
0x108e   : > { %3751 = vmatmul.mubr.msk.f32.vlgmr.msra.gmra.mrb[28].mxu1 %vm573_vm0, %v2689_v30 }
0x108f   : > { %3895 = vmatpush3.bf16.msra.mxu1 %v3894_v29  ;;  %3769 = vmatprep.mubr.msk.f32.mxu1 %vm4140_vm1, %v4138_v7 }
0x1090   : > { %3896 = vmatprep.subr.bf16.mxu1 %v4139_v12 }
0x1093   : > { %3898 = vmatpush3.bf16.msra.mxu1 %v3897_v33 }
0x1094   : > { %3899 = vmatprep.subr.bf16.mxu1 %v4139_v12 }
0x1097   : > { %3901 = vmatpush3.bf16.msra.mxu1 %v3900_v36 }
0x1098   : > { %3902 = vmatprep.subr.bf16.mxu1 %v4139_v12 }
0x109b   : > { %3904 = vmatpush3.bf16.msra.mxu1 %v3903_v39 }
0x109c   : > { %3772 = vmatprep.subr.mxu1 %v4138_v7 }
0x1161   : > { %v2772_v41 = vpop.f32.mrb[28].mxu1 }
0x1162   : > { %v2773_v42 = vadd.f32 %v3400_v40, %v2772_v41  ;;  %v3752_v43 = vpop.f32.mrb[29].mxu1 }
0x1164   : > { %v2776_v44 = vmax.f32 %v2773_v42, 0.0 }
0x1166   : > { %3770 = vmatmul.mubr.msk.f32.vlgmr.msra.gmra.mrb[30].mxu1 %vm1396_vm3, %v2776_v44 }
0x1167   : > { %3774 = vmatprep.mubr.msk.f32.mxu1 %vm4140_vm1, %v4138_v7 }
0x1239   : > { %v2863_v46 = vpop.f32.mrb[30].mxu1 }
0x123a   : > { %v2864_v47 = vadd.f32 %v3411_v45, %v2863_v46  ;;  %v3771_v48 = vpop.f32.mrb[31].mxu1 }
0x123c   : > { %v2867_v49 = vadd.f32 %v2864_v47, %v2689_v30 }
0x123e   : > { %v2872_v50 = vsel %vm573_vm0, %v2867_v49, 0.0 }
0x123f   : > { %2873 = vadd.xlane.f32.xlu0 %v2872_v50 }
0x12cc   : > { %v2874_v51 = vpop.xlane.xlu0 %2873 }
0x12cd   : > { %v2875_v52 = vmul.f32 0.03125, %v2874_v51 }
0x12cf   : > { %v2876_v53 = vsub.f32 %v2867_v49, %v2875_v52 }
0x12d1   : > { %v2877_v54 = vmul.f32 %v2876_v53, %v2876_v53 }
0x12d3   : > { %v2878_v55 = vsel %vm573_vm0, %v2877_v54, 0.0 }
0x12d4   : > { %2879 = vadd.xlane.f32.xlu0 %v2878_v55 }
0x1361   : > { %v2880_v56 = vpop.xlane.xlu0 %2879 }
0x1362   : > { %v2881_v57 = vmul.f32 0.03125, %v2880_v56 }
0x1364   : > { %v2882_v58 = vadd.f32 1e-05, %v2881_v57 }
0x1366   : > { %4004 = vrsqrt.f32 %v2882_v58 }
0x1370   : > { %v4005_v59 = vpop.eup %4004 }
0x1371   : > { %v2884_v61 = vmul.f32 %v4005_v59, %v2876_v53 }
0x1373   : > { %v2891_v63 = vmul.f32 %v3415_v60, %v2884_v61 }
0x1375   : > { %v2898_v0 = vadd.f32 %v3416_v62, %v2891_v63 }
0x1377   : > { %3773 = vmatpush3.xpose.msk.msra.mxu1 %vm573_vm0, %v2898_v0 }
0x1378   : > { %3777 = vmatprep.subr.mxu1 %v4138_v7 }
0x137a   : > { %3775 = vmatmul.mubr.msk.f32.vlgmr.msra.gmra.mrb[32].mxu1 %vm573_vm0, %v2901_v1 }
0x137b   : > { %3778 = vmatpush3.msra.mxu1 %v2898_v0  ;;  %3779 = vmatprep.mubr.msk.f32.mxu1 %vm4140_vm1, %v4138_v7  ;;  %v3065_v7 = vld [vmem:[%s4957_s13] sm:$0xff] }
0x137c   : > { %v3906_v14 = vpack.c.bf16 %v3066_v13, %v3065_v7 }
0x137e   : > { %3907 = vmatpush3.bf16.msra.mxu0 %v3906_v14 }
0x137f   : > { %3908 = vmatprep.subr.bf16.mxu0 %v4139_v12  ;;  %v3069_v12 = vld [vmem:[%s4958_s14] sm:$0x1] }
0x1382   : > { %3910 = vmatpush3.bf16.msra.mxu0 %v3909_v15 }
0x144d   : > { %v2974_v2 = vpop.f32.mrb[32].mxu1 }
0x144e   : > { %v2978_v3 = vmul.f32 0.17677669, %v2974_v2  ;;  %v3776_v4 = vpop.f32.mrb[33].mxu1 }
0x1450   : > { %v2980_v5 = vsel %vm2979_vm5, %v2978_v3, -inf }
0x1451   : > { %2981 = vmax.xlane.f32.xlu1 %v2980_v5 }
0x14de   : > { %v2982_v6 = vpop.xlane.xlu1 %2981 }
0x14df   : > { %v2983_v8 = vsub.f32 %v2978_v3, %v2982_v6 }
0x14e1   : > { %v2984_v9 = vmul.f32 1.442695, %v2983_v8 }
0x14e3   : > { %4006 = vpow2.f32 %v2984_v9 }
0x14ed   : > { %v4007_v10 = vpop.eup %4006 }
0x14ee   : > { %v2986_v11 = vsel %vm2979_vm5, %v4007_v10, 0.0 }
0x14ef   : > { %2987 = vadd.xlane.f32.xlu0 %v2986_v11 }
0x157c   : > { %v2988_v23 = vpop.xlane.xlu0 %2987 }
0x157d   : > { %4008 = vrcp.f32 %v2988_v23 }
0x1587   : > { %v4009_v16 = vpop.eup %4008 }
0x1588   : > { %v2990_v17 = vmul.f32 %v4009_v16, %v4007_v10 }
0x158a   : > { %3780 = vmatmul.mubr.msk.f32.vlgmr.msra.gmra.mrb[34].mxu1 %vm1032_vm2, %v2990_v17  ;;  %2991 = vst.msk [vmem:[%s548_s15] sm:$0x1] %vm2979_vm5, %v2990_v17 }
0x165d   : > { %v3061_v19 = vpop.f32.mrb[34].mxu1 }
0x165e   : > { %v3781_v21 = vpop.f32.mrb[35].mxu1  ;;  %3791 = vmatmul.mubr.msk.f32.vlgmr.msra.gmra.mrb[20].mxu0 %vm573_vm0, %v3061_v19 }
0x1731   : > { %v3139_v22 = vpop.f32.mrb[20].mxu0 }
0x1732   : > { %v4827_v24 = vadd.f32 %v3139_v22, %v3069_v12  ;;  %v3792_v25 = vpop.f32.mrb[21].mxu0 }
0x1734   : > { %v3144_v26 = vsel %vm3143_vm6, %v4827_v24, -inf }
0x1735   : > { %3145 = vmax.xlane.f32.xlu1 %v3144_v26 }
0x17c2   : > { %v4831_v27 = vpop.xlane.xlu1 %3145 }
0x17c3   : > { %v3147_v28 = vsub.f32 %v4827_v24, %v4831_v27 }
0x17c5   : > { %v3148_v29 = vmul.f32 1.442695, %v3147_v28 }
0x17c7   : > { %4010 = vpow2.f32 %v3148_v29 }
0x17d1   : > { %v4011_v30 = vpop.eup %4010 }
0x17d2   : > { %v3150_v31 = vsel %vm3143_vm6, %v4011_v30, 0.0 }
0x17d3   : > { %3151 = vadd.xlane.f32.xlu0 %v3150_v31 }
0x17d4   : > { %4027 = shalt.err (!%p4024_p3)
}
0x17d5   : > { %s4028_s15 = scalar_lea.hbm %s4843_s19, 16  ;;  %s4032_s29 = scalar_lea.hbm %s4960_s16, 32 }
0x17d6   : > { %p4029_p4 = scmp.ne.s32.totalorder %s4843_s19, %s4028_s15  ;;  %p4033_p9 = scmp.lt.u32.totalorder %s4843_s19, %s4960_s16 }
0x17d7   : > { %p4034_p10 = scmp.lt.u32.totalorder %s4032_s29, %s4028_s15  ;;  %p4036_p12 = scmp.lt.u32.totalorder %s4028_s15, %s4843_s19 }
0x17d8   : > { %p4030_p7 = pnand %p4029_p4, %p4277_p5 }
0x17d9   : > { %p4035_p11 = por %p4034_p10, %p4033_p9 }
0x17da   : > { %p4031_p8 = pneg %p4030_p7 }
0x17db   : > { %p4037_p13 = por %p4036_p12, %p4035_p11 }
0x17dd   : > { %p4038_p0 = pnand %p4037_p13, %p4031_p8 }
0x17df   : > { %4041 = shalt.err (!%p4038_p0)
}
0x17e0   : > { %3912 = dma.vmem_to_hbm [thread:$0]  (%p4277_p5), %s3194_s30, 16, %s4843_s19, %s4845_s26  }
0x17e1   : > { %s3424_s3 = sshll.u32 %s4258_s28, 7  ;;  %s3206_s29 = sshll.u32 %s4655_s0, 4  ;;  %s3207_s29 = int_to_ptr.vmem [resolvable:$true] %s3206_s29 }
0x17e2   : > { %s4869_s22 = scalar_lea.hbm %s4961_s17, %s3424_s3  ;;  %s4042_s15 = scalar_lea.vmem %s3207_s29, 128 }
0x17e3   : > { %p4043_p1 = scmp.ne.s32.totalorder %s3207_s29, %s4042_s15  ;;  %s4145_s20 = smov [#allocation6]  }
0x17e4   : > { %s4046_s2 = sshll.u32 %s4145_s20, 4  ;;  %s4047_s2 = int_to_ptr.vmem [resolvable:$false] %s4046_s2 }
0x17e5   : > { %p4044_p2 = pnand %p4043_p1, %p4277_p5  ;;  %s4048_s21 = scalar_lea.vmem %s4047_s2, 256 }
0x17e6   : > { %p4049_p4 = scmp.lt.s32.totalorder %s3207_s29, %s4047_s2  ;;  %p4050_p7 = scmp.lt.s32.totalorder %s4048_s21, %s4042_s15 }
0x17e7   : > { %p4045_p3 = pneg %p4044_p2 }
0x17e8   : > { %p4051_p8 = por %p4050_p7, %p4049_p4 }
0x17ea   : > { %p4052_p9 = pnand %p4051_p8, %p4045_p3 }
0x17ec   : > { %4055 = shalt.err (!%p4052_p9)
}
0x17ed   : > { %s4056_s0 = scalar_lea.hbm %s4869_s22, 128  ;;  %s4060_s3 = scalar_lea.hbm %s4961_s17, 256 }
0x17ee   : > { %p4057_p10 = scmp.ne.s32.totalorder %s4869_s22, %s4056_s0  ;;  %p4061_p13 = scmp.lt.u32.totalorder %s4869_s22, %s4961_s17 }
0x17ef   : > { %p4062_p0 = scmp.lt.u32.totalorder %s4060_s3, %s4056_s0  ;;  %p4064_p2 = scmp.lt.u32.totalorder %s4056_s0, %s4869_s22 }
0x17f0   : > { %p4058_p11 = pnand %p4057_p10, %p4277_p5 }
0x17f1   : > { %p4063_p1 = por %p4062_p0, %p4061_p13 }
0x17f2   : > { %p4059_p12 = pneg %p4058_p11 }
0x17f3   : > { %p4065_p3 = por %p4064_p2, %p4063_p1 }
0x17f5   : > { %p4066_p4 = pnand %p4065_p3, %p4059_p12 }
0x17f7   : > { %4069 = shalt.err (!%p4066_p4)
}
0x17f8   : > { %3913 = dma.vmem_to_hbm [thread:$0]  (%p4277_p5), %s3207_s29, 128, %s4869_s22, %s4845_s26  }
0x17f9   : > { %s542_s21 = scalar_lea.vmem [#allocation2], %s4647_s18  ;;  %s4997_s20 = sshll.u32 %s4258_s28, 4 }
0x17fa   : > { %s3180_s15 = sshll.u32 %s542_s21, 4  ;;  %s4998_s19 = sld [smem:[#allocation19_spill]]  ;;  %s4900_s15 = int_to_ptr.vmem [resolvable:$true] %s3180_s15 }
0x17fb   : > { %s3159_s26 = scalar_lea.sflag [#allocation3], %s4647_s18  ;;  %s4070_s22 = scalar_lea.vmem %s4900_s15, 16 }
0x17fc   : > { %p4071_p7 = scmp.ne.s32.totalorder %s4900_s15, %s4070_s22  ;;  %s4146_s29 = smov [#allocation2]  }
0x17fd   : > { %s4074_s28 = sshll.u32 %s4146_s29, 4  ;;  %s4075_s28 = int_to_ptr.vmem [resolvable:$false] %s4074_s28 }
0x17fe   : > { %p4072_p8 = pnand %p4071_p7, %p4277_p5  ;;  %s4076_s3 = scalar_lea.vmem %s4075_s28, 32 }
0x17ff   : > { %p4077_p10 = scmp.lt.s32.totalorder %s4900_s15, %s4075_s28  ;;  %p4078_p11 = scmp.lt.s32.totalorder %s4076_s3, %s4070_s22 }
0x1800   : > { %s4898_s30 = scalar_lea.hbm %s4998_s19, %s4997_s20  ;;  %p4073_p9 = pneg %p4072_p8 }
0x1801   : > { %p4079_p12 = por %p4078_p11, %p4077_p10 }
0x1803   : > { %p4080_p13 = pnand %p4079_p12, %p4073_p9 }
0x1860   : > { %v3152_v32 = vpop.xlane.xlu0 %3151 }
0x1861   : > { %4012 = vlog2.f32 %v3152_v32 }
0x186b   : > { %v4013_v33 = vpop.eup %4012 }
0x186c   : > { %v3154_v34 = vmul.f32 0.6931472, %v4013_v33 }
0x186e   : > { %v3155_v35 = vadd.f32 %v3154_v34, %v4831_v27 }
0x1870   : > { %v3156_v36 = vsub.f32 %v4827_v24, %v3155_v35 }
0x1872   : > { %3157 = vst.msk [vmem:[%s542_s21] sm:$0x1] %vm3143_vm6, %v3156_v36 }
0x1873   : > { %4083 = shalt.err (!%p4080_p13)
}
0x1874   : > { %s4084_s18 = scalar_lea.hbm %s4898_s30, 16  ;;  %s4088_s21 = scalar_lea.hbm %s4998_s19, 32 }
0x1875   : > { %p4085_p0 = scmp.ne.s32.totalorder %s4898_s30, %s4084_s18  ;;  %p4089_p3 = scmp.lt.u32.totalorder %s4898_s30, %s4998_s19 }
0x1876   : > { %p4090_p4 = scmp.lt.u32.totalorder %s4088_s21, %s4084_s18  ;;  %p4092_p8 = scmp.lt.u32.totalorder %s4084_s18, %s4898_s30 }
0x1877   : > { %p4086_p1 = pnand %p4085_p0, %p4277_p5 }
0x1878   : > { %p4091_p7 = por %p4090_p4, %p4089_p3 }
0x1879   : > { %p4087_p2 = pneg %p4086_p1 }
0x187a   : > { %p4093_p9 = por %p4092_p8, %p4091_p7 }
0x187c   : > { %p4094_p10 = pnand %p4093_p9, %p4087_p2 }
0x187e   : > { %4097 = shalt.err (!%p4094_p10)
}
0x187f   : > { %3911 = dma.vmem_to_hbm [thread:$0]  (%p4277_p5), %s4900_s15, 16, %s4898_s30, %s3159_s26  }
0x1880 PF: > { %s4999_s0 = sld [smem:[#allocation11_spill]]  ;;  %s5000_s22 = sld [smem:[#allocation9_spill]] }
0x1886   : > { %p3927_p11 = scmp.ge.s32.totalorder %s4999_s0, 2  ;;  %s3218_s28 = sand.u32 1, %s5000_s22  }
0x1887   : > { %s3219_s3 = scalar_lea.sflag [#allocation3], %s3218_s28 }
0x1888   : > { %p3918_p12 = pnand %p3927_p11, %p4281_p6 }
0x188a   : > { %4115 = dma.done.wait (!%p3918_p12), %s3219_s3, 16  }
0x188b   : > { %4117 = vsyncadd (!%p3918_p12), %s3219_s3, 4294967280  ;;  %s5002_s18 = sadd.s32 4294967294, %s4999_s0  }
0x188c   : > { %s3226_s27 = sand.u32 1, %s5002_s18  }
0x188d   : > { %s3227_s24 = scalar_lea.sflag [#allocation5], %s3226_s27 }
0x188e   : > { %4119 = dma.done.wait (!%p3918_p12), %s3227_s24, 144  }
0x188f   : > { %4121 = vsyncadd (!%p3918_p12), %s3227_s24, 4294967152  ;;  %s5003_s27 = sld [smem:[#allocation12_spill]]  ;;  %s5004_s1 = sld [smem:[#allocation10_spill]] }
0x1890   : > { %s5005_s26 = sld [smem:[#allocation13_spill]]  ;;  %s5006_s24 = smov %s4128_s25 }
0x1895   : > { %p31_p5 = scmp.ge.s32.totalorder %s5003_s27, 4   ;;  %s5007_s25 = smov %s5004_s1 }
0x1897   :  { %33 = sbr.rel (!%p31_p5) target bundleno = 11 (0xb), region = 158 }
0x189e   :  { %3240 = vsyncpa [#allocation3], 1 }
0x189f   :  { %3242 = vsyncpa [#allocation3 + $0x1], 1 }
0x18a0   :  { %3243 = vsyncpa [#allocation5], 1 }
0x18a1   :  { %3245 = vsyncpa [#allocation5 + $0x1], 1 }

</bundles_post_ra>
